<compile_context>
chip_gen: v6e
topology: v6e:2x2x1
jax: 0.10.0
libtpu: 0.0.40
codegen_flags: <defaults>
</compile_context>

<pallas_src>
import functools

import jax
import jax.numpy as jnp
from jax import lax
from jax.experimental import pallas as pl
from jax.experimental.pallas import tpu as pltpu

LANE = 128                 # pixels per block row (vreg lane width)
CH = 3                     # rgb channels
MAX_BLOCK_ROWS = 1024      # 1024 rows * 128 px = 131072 pixels (~4 MB input) per step
N_CORE_SPLIT = 2           # leading "parallel" grid axis (v7x megacore)


def _cdiv(a, b):
    return -(-a // b)


def _round_up(a, b):
    return _cdiv(a, b) * b


# ----------------------------------------------------------------------------------
# Pallas kernel: per-pixel reductions over the image
# ----------------------------------------------------------------------------------
def _loss_reduce_kernel(rgb_ref, gt_ref, facer_ref, nom_ref, mm_ref, w_ref, e_ref,
                        out_ref, acc_ref):
    step = pl.program_id(1)

    @pl.when(step == 0)
    def _init():
        acc_ref[...] = jnp.zeros_like(acc_ref)

    facer = facer_ref[...].astype(jnp.int32)                    # (R, 128) labels
    nom = (nom_ref[...].astype(jnp.int32) != 0).astype(jnp.float32)
    valid = mm_ref[...].astype(jnp.int32) == 0                  # valid <=> mm == 0
    w = w_ref[...]                                              # (R, 128) f32

    # rgb_loss_mask = ~((facer == 3) | (facer == 0)); foreground_mask = rgb_loss_mask
    fg = jnp.logical_not((facer == 3) | (facer == 0)).astype(jnp.float32)
    mask = fg * nom                                             # network & object
    scale = jnp.where(valid, 1.0, 1.0 / 25.0)                   # /25 on mouth interior
    coeff = mask * scale

    # rgb / gt rows hold 128 pixels x 3 interleaved channels (lane = 3*j + c).
    absd = jnp.abs(rgb_ref[...] - gt_ref[...])                  # (R, 384)
    # Per-pixel channel sum via constant 0/1 expansion matrix on the (idle) MXU.
    per_pix = jnp.dot(absd, e_ref[...],
                      preferred_element_type=jnp.float32,
                      precision=lax.Precision.HIGHEST)          # (R, 128)

    wcl = jnp.clip(w, 0.0, 1.0)
    prod = fg * wcl                                             # |y_true * y_pred|
    sums = fg + wcl                                             # |y_true| + |y_pred|
    hair = (facer == 14).astype(jnp.float32)

    # Elementwise-only (per-lane) accumulation; no cross-lane work inside the loop.
    acc_ref[0] += per_pix * coeff        # masked / scaled L1 rgb sum
    acc_ref[1] += prod                   # jaccard intersection (full image)
    acc_ref[2] += sums                   # jaccard sum          (full image)
    acc_ref[3] += prod * hair            # jaccard intersection (hair region)
    acc_ref[4] += sums * hair            # jaccard sum          (hair region)
    acc_ref[5] += hair                   # n_hair
    acc_ref[6] += mask                   # n_inter (network & object count)

    @pl.when(step == pl.num_programs(1) - 1)
    def _finalize():
        # Single final cross-lane reduction, packed into this core's (1, 8) output row.
        totals = [jnp.sum(acc_ref[q], keepdims=True) for q in range(7)]
        totals.append(jnp.zeros((1, 1), jnp.float32))            # unused lane 7
        out_ref[0] = jnp.concatenate(totals, axis=1)             # (1, 8)


@functools.partial(jax.jit, static_argnames=("max_block_rows", "n_split"))
def _image_space_reductions(rgb, gt, facer, nom, mm, w, *,
                            max_block_rows=MAX_BLOCK_ROWS, n_split=N_CORE_SPLIT):
    """rgb, gt: (N, 3) f32 (native channel-last).  facer/nom/mm: (N,) int8.  w: (N,) f32.
    Returns the (8,) f32 vector of global sums."""
    assert max_block_rows % 32 == 0
    n = rgb.shape[0]
    rows = max(_cdiv(n, LANE), 1)
    per_core = _round_up(_cdiv(rows, n_split), 32)          # >= 32, multiple of 32
    steps = _cdiv(per_core, max_block_rows)                 # grid steps per core
    block_rows = _round_up(_cdiv(per_core, steps), 32)      # <= max_block_rows
    rows_pad = n_split * steps * block_rows
    n_pad = rows_pad * LANE

    def pad1d(x, total):
        return jnp.pad(x, (0, total - x.shape[0]))          # no-op when already aligned

    rgb_p = pad1d(rgb.reshape(-1), n_pad * CH).reshape(rows_pad, LANE * CH)
    gt_p = pad1d(gt.reshape(-1), n_pad * CH).reshape(rows_pad, LANE * CH)
    facer_p = pad1d(facer, n_pad).reshape(rows_pad, LANE)
    nom_p = pad1d(nom, n_pad).reshape(rows_pad, LANE)
    mm_p = pad1d(mm, n_pad).reshape(rows_pad, LANE)
    w_p = pad1d(w, n_pad).reshape(rows_pad, LANE)

    # Constant channel-sum matrix: E[3*j + c, j] = 1.
    e_mat = (jnp.arange(LANE * CH, dtype=jnp.int32)[:, None] // CH
             == jnp.arange(LANE, dtype=jnp.int32)[None, :]).astype(jnp.float32)

    row_map = lambda c, i: (c * steps + i, 0)
    out = pl.pallas_call(
        _loss_reduce_kernel,
        out_shape=jax.ShapeDtypeStruct((n_split, 1, 8), jnp.float32),
        grid_spec=pltpu.PrefetchScalarGridSpec(
            num_scalar_prefetch=0,
            grid=(n_split, steps),
            in_specs=[
                pl.BlockSpec((block_rows, LANE * CH), row_map),        # rgb   (f32)
                pl.BlockSpec((block_rows, LANE * CH), row_map),        # gt    (f32)
                pl.BlockSpec((block_rows, LANE), row_map),             # facer (int8)
                pl.BlockSpec((block_rows, LANE), row_map),             # nom   (int8)
                pl.BlockSpec((block_rows, LANE), row_map),             # mm    (int8)
                pl.BlockSpec((block_rows, LANE), row_map),             # w     (f32)
                pl.BlockSpec((LANE * CH, LANE), lambda c, i: (0, 0)),  # E constant
            ],
            out_specs=pl.BlockSpec((1, 1, 8), lambda c, i: (c, 0, 0)),
            scratch_shapes=[pltpu.VMEM((7, block_rows, LANE), jnp.float32)],
        ),
        compiler_params=pltpu.CompilerParams(
            dimension_semantics=("parallel", "arbitrary")),
    )(rgb_p, gt_p, facer_p, nom_p, mm_p, w_p, e_mat)
    return jnp.sum(out[:, 0, :], axis=0)                    # add the per-core partials


# ----------------------------------------------------------------------------------
# Module wrapper (forward pass semantics of ImageSpaceLosses)
# ----------------------------------------------------------------------------------
class ImageSpaceLossesPallas:
    def __init__(self, rgb_weight, mask_weight, lambdas_reg, reg_weight_expr):
        self.rgb_weight = float(rgb_weight)
        self.mask_weight = float(mask_weight)
        self.lambdas_reg = lambdas_reg
        self.reg_weight_expr = float(reg_weight_expr)

    @staticmethod
    def _jaccard_from_sums(intersection, sum_, smooth=5.0):
        jac = (intersection + smooth) / (sum_ - intersection + smooth)
        return (1.0 - jac) * smooth

    def __call__(self, model_outputs, ground_truth):
        rgb_values = jnp.asarray(model_outputs['rgb_values'], jnp.float32)   # (N, 3)
        gt = jnp.asarray(ground_truth['rgb'], jnp.float32)
        if gt.ndim == 3:
            gt = gt[0]                                                        # (N, 3)
        facer = jnp.asarray(model_outputs['object_mask']).reshape(-1)
        nom = jnp.asarray(model_outputs['network_object_mask']).reshape(-1)
        w = jnp.asarray(model_outputs['weights_sum'], jnp.float32).reshape(-1)
        mm = jnp.asarray(ground_truth['mm']).reshape(-1)
        n_pix = rgb_values.shape[0]

        reg_loss = 0.0
        for k in model_outputs['reg_loss'].keys():
            reg_loss = reg_loss + self.lambdas_reg[k] * model_outputs['reg_loss'][k]
        reg_loss_expr = model_outputs['reg_loss_expr']

        if self.rgb_weight > 0:
            # facer segmentation labels are small (< 128) -> int8 is lossless.
            facer_i8 = facer.astype(jnp.int8)
            nom_i8 = (nom != 0).astype(jnp.int8)
            mm_i8 = (mm != 0).astype(jnp.int8)       # valid <=> mm == 0 preserved

            sums8 = _image_space_reductions(rgb_values, gt, facer_i8, nom_i8, mm_i8, w)
            rgb_sum = sums8[0]
            inter_full, sum_full = sums8[1], sums8[2]
            inter_hair, sum_hair = sums8[3], sums8[4]
            n_hair, n_inter = sums8[5], sums8[6]

            # rgb loss: sum |rgb - gt| / N over (network & object), /25 on mouth interior
            rgb_loss = jnp.where(n_inter == 0, 0.0, rgb_sum / float(n_pix))

            # mask (Jaccard) loss; n_not_hair over the real (unpadded) pixels
            n_not_hair = float(n_pix) - n_hair
            nn_hair = (n_not_hair > 0).astype(jnp.float32)
            jac_full = self._jaccard_from_sums(inter_full, sum_full)
            jac_hair = self._jaccard_from_sums(inter_hair, sum_hair)
            mask_loss_full = jnp.where(nn_hair > 0, jac_full, 0.0)
            mask_loss_hair = jnp.where(n_hair > 0, jac_hair, 0.0)
            mask_loss = (n_hair * mask_loss_full + nn_hair * mask_loss_hair / 5.0) / (
                nn_hair + n_hair)

            loss = (self.rgb_weight * rgb_loss + self.mask_weight * mask_loss +
                    reg_loss + self.reg_weight_expr * reg_loss_expr)
        else:
            rgb_loss = jnp.zeros(())
            mask_loss = jnp.zeros(())
            loss = reg_loss + self.reg_weight_expr * reg_loss_expr

        return_dict = {'loss': loss, 'rgb_loss': rgb_loss, 'mask_loss': mask_loss,
                       'reg_loss_expr': reg_loss_expr}
        return_dict.update(model_outputs['reg_loss'])
        return return_dict


# ----------------------------------------------------------------------------------
# Pure-JAX reference (mirrors the PyTorch semantics) for a sanity check
# ----------------------------------------------------------------------------------
def _reference(module, model_outputs, ground_truth):
    rgb_values = jnp.asarray(model_outputs['rgb_values'], jnp.float32)
    rgb_gt = jnp.asarray(ground_truth['rgb'][0], jnp.float32)
    facer = jnp.asarray(model_outputs['object_mask'], jnp.int32)
    nom = jnp.asarray(model_outputs['network_object_mask'], bool)
    w = jnp.asarray(model_outputs['weights_sum'], jnp.float32)
    valid = jnp.asarray(ground_truth['mm']) == 0
    n_pix = rgb_values.shape[0]

    fg = ~((facer == 3) | (facer == 0))
    mask = nom & fg
    scale = jnp.where(valid, 1.0, 1.0 / 25.0)
    per_pix = jnp.sum(jnp.abs(rgb_values - rgb_gt), axis=-1)
    rgb_loss = jnp.where(jnp.sum(mask) == 0, 0.0,
                         jnp.sum(per_pix * mask * scale) / float(n_pix))

    def jac(y_pred, y_true, smooth=5.0):
        y_pred = jnp.clip(y_pred, 0.0, 1.0)
        inter = jnp.sum(jnp.abs(y_true * y_pred))
        s = jnp.sum(jnp.abs(y_true) + jnp.abs(y_pred))
        return (1.0 - (inter + smooth) / (s - inter + smooth)) * smooth

    hair = facer == 14
    hf = hair.astype(jnp.float32)
    n_hair = jnp.sum(hf)
    nn_hair = (jnp.sum(1.0 - hf) > 0).astype(jnp.float32)
    jac_full = jac(w, fg.astype(jnp.float32))
    jac_hair = jac(jnp.where(hair, jnp.clip(w, 0, 1), 0.0),
                   (fg & hair).astype(jnp.float32))
    ml_full = jnp.where(nn_hair > 0, jac_full, 0.0)
    ml_hair = jnp.where(n_hair > 0, jac_hair, 0.0)
    mask_loss = (n_hair * ml_full + nn_hair * ml_hair / 5.0) / (nn_hair + n_hair)

    reg_loss = 0.0
    for k in model_outputs['reg_loss']:
        reg_loss = reg_loss + module.lambdas_reg[k] * model_outputs['reg_loss'][k]
    loss = (module.rgb_weight * rgb_loss + module.mask_weight * mask_loss +
            reg_loss + module.reg_weight_expr * model_outputs['reg_loss_expr'])
    return loss, rgb_loss, mask_loss


if __name__ == "__main__":
    key = jax.random.PRNGKey(0)
    N = 1000          # deliberately NOT a tile multiple -> exercises the padding path
    C = 3

    k1, k2, k3, k4, k5, k6, k7 = jax.random.split(key, 7)
    rgb_values = jax.random.uniform(k1, (N, C), jnp.float32)
    rgb_gt = jax.random.uniform(k2, (1, N, C), jnp.float32)
    facer_mask = jax.random.choice(k3, jnp.array([0, 1, 2, 3, 14], jnp.int32), (N,))
    network_object_mask = jax.random.bernoulli(k4, 0.7, (N,))
    weights_sum = jax.random.uniform(k5, (N,), jnp.float32, -0.2, 1.2)
    mm = jax.random.bernoulli(k6, 0.2, (N,)).astype(jnp.float32)  # valid = (mm == 0)

    reg_loss_dict = {
        'reg_geo': jax.random.uniform(k7, (), jnp.float32),
        'reg_app': jnp.float32(0.3),
        'reg_pose': jnp.float32(0.07),
    }
    model_outputs = {
        'rgb_values': rgb_values,
        'network_object_mask': network_object_mask,
        'object_mask': facer_mask,
        'weights_sum': weights_sum,
        'reg_loss': reg_loss_dict,
        'reg_loss_expr': jnp.float32(0.11),
    }
    ground_truth = {'rgb': rgb_gt, 'mm': mm}

    lambdas_reg = {'reg_geo': 0.1, 'reg_app': 0.05, 'reg_pose': 0.01}
    module = ImageSpaceLossesPallas(rgb_weight=1.0, mask_weight=0.5,
                                    lambdas_reg=lambdas_reg, reg_weight_expr=0.25)

    out = module(model_outputs, ground_truth)
    jax.block_until_ready(out['loss'])

    ref_loss, ref_rgb, ref_mask = _reference(module, model_outputs, ground_truth)
    assert jnp.allclose(out['loss'], ref_loss, atol=1e-4, rtol=1e-4)
    assert jnp.allclose(out['rgb_loss'], ref_rgb, atol=1e-5, rtol=1e-4)
    assert jnp.allclose(out['mask_loss'], ref_mask, atol=1e-5, rtol=1e-4)

    print("KERNEL_OK")
</pallas_src>

<mosaic_0001>
module attributes {stable_mosaic.version = 11 : i64} {
  func.func @_loss_reduce_kernel(%arg0: i32, %arg1: i32, %arg2: memref<32x384xf32, #tpu.memory_space<vmem>>, %arg3: memref<32x384xf32, #tpu.memory_space<vmem>>, %arg4: memref<32x128xi8, #tpu.memory_space<vmem>>, %arg5: memref<32x128xi8, #tpu.memory_space<vmem>>, %arg6: memref<32x128xi8, #tpu.memory_space<vmem>>, %arg7: memref<32x128xf32, #tpu.memory_space<vmem>>, %arg8: memref<384x128xf32, #tpu.memory_space<vmem>>, %arg9: memref<1x1x8xf32, #tpu.memory_space<vmem>>, %arg10: memref<7x32x128xf32, #tpu.memory_space<vmem>>) attributes {dimension_semantics = [#tpu.dimension_semantics<parallel>, #tpu.dimension_semantics<arbitrary>], iteration_bounds = array<i64: 2, 1>, scalar_prefetch = 0 : i64, scratch_operands = 1 : i64, tpu.core_type = #tpu.core_type<tc>, window_params = [{transform_indices = @transform_0, window_bounds = array<i64: 32, 384>}, {transform_indices = @transform_1, window_bounds = array<i64: 32, 384>}, {transform_indices = @transform_2, window_bounds = array<i64: 32, 128>}, {transform_indices = @transform_3, window_bounds = array<i64: 32, 128>}, {transform_indices = @transform_4, window_bounds = array<i64: 32, 128>}, {transform_indices = @transform_5, window_bounds = array<i64: 32, 128>}, {pipeline_mode = #tpu.pipeline_mode<synchronous>, transform_indices = @transform_6, window_bounds = array<i64: 384, 128>}, {transform_indices = @transform_7, window_bounds = array<i64: 1, 1, 8>}]} {
    %c0_i32 = arith.constant 0 : i32
    %0 = arith.cmpi eq, %arg1, %c0_i32 : i32
    %1 = arith.extui %0 : i1 to i32
    %c0_i32_0 = arith.constant 0 : i32
    %2 = arith.cmpi ne, %1, %c0_i32_0 : i32
    scf.if %2 {
      %cst_60 = arith.constant 0.000000e+00 : f32
      %93 = vector.broadcast %cst_60 : f32 to vector<7x32x128xf32>
      %c0_61 = arith.constant 0 : index
      %c0_62 = arith.constant 0 : index
      %c0_63 = arith.constant 0 : index
      %94 = vector.load %arg10[%c0_61, %c0_62, %c0_63] : memref<7x32x128xf32, #tpu.memory_space<vmem>>, vector<7x32x128xf32>
      tpu.vector_store %arg10[%c0_61, %c0_62, %c0_63], %93 {strides = array<i32>} : memref<7x32x128xf32, #tpu.memory_space<vmem>>, vector<7x32x128xf32>,
    } else {
    }
    %c0 = arith.constant 0 : index
    %c0_1 = arith.constant 0 : index
    %3 = vector.load %arg4[%c0, %c0_1] : memref<32x128xi8, #tpu.memory_space<vmem>>, vector<32x128xi8>
    %4 = arith.extsi %3 : vector<32x128xi8> to vector<32x128xi32>
    %c0_2 = arith.constant 0 : index
    %c0_3 = arith.constant 0 : index
    %5 = vector.load %arg5[%c0_2, %c0_3] : memref<32x128xi8, #tpu.memory_space<vmem>>, vector<32x128xi8>
    %6 = arith.extsi %5 : vector<32x128xi8> to vector<32x128xi32>
    %c0_i32_4 = arith.constant 0 : i32
    %7 = vector.broadcast %c0_i32_4 : i32 to vector<32x128xi32>
    %8 = arith.cmpi ne, %6, %7 : vector<32x128xi32>
    %9 = arith.extui %8 : vector<32x128xi1> to vector<32x128xi32>
    %10 = arith.sitofp %9 : vector<32x128xi32> to vector<32x128xf32>
    %c0_5 = arith.constant 0 : index
    %c0_6 = arith.constant 0 : index
    %11 = vector.load %arg6[%c0_5, %c0_6] : memref<32x128xi8, #tpu.memory_space<vmem>>, vector<32x128xi8>
    %12 = arith.extsi %11 : vector<32x128xi8> to vector<32x128xi32>
    %c0_i32_7 = arith.constant 0 : i32
    %13 = vector.broadcast %c0_i32_7 : i32 to vector<32x128xi32>
    %14 = arith.cmpi eq, %12, %13 : vector<32x128xi32>
    %c0_8 = arith.constant 0 : index
    %c0_9 = arith.constant 0 : index
    %15 = vector.load %arg7[%c0_8, %c0_9] : memref<32x128xf32, #tpu.memory_space<vmem>>, vector<32x128xf32>
    %c3_i32 = arith.constant 3 : i32
    %16 = vector.broadcast %c3_i32 : i32 to vector<32x128xi32>
    %17 = arith.cmpi eq, %4, %16 : vector<32x128xi32>
    %c0_i32_10 = arith.constant 0 : i32
    %18 = vector.broadcast %c0_i32_10 : i32 to vector<32x128xi32>
    %19 = arith.cmpi eq, %4, %18 : vector<32x128xi32>
    %20 = arith.ori %17, %19 : vector<32x128xi1>
    %cst = arith.constant dense<true> : vector<32x128xi1>
    %21 = arith.xori %20, %cst : vector<32x128xi1>
    %22 = arith.extui %21 : vector<32x128xi1> to vector<32x128xi32>
    %23 = arith.sitofp %22 : vector<32x128xi32> to vector<32x128xf32>
    %24 = arith.mulf %23, %10 : vector<32x128xf32>
    %cst_11 = arith.constant 1.000000e+00 : f32
    %cst_12 = arith.constant 4.000000e-02 : f32
    %25 = vector.broadcast %cst_11 : f32 to vector<32x128xf32>
    %26 = vector.broadcast %cst_12 : f32 to vector<32x128xf32>
    %27 = arith.select %14, %25, %26 : vector<32x128xi1>, vector<32x128xf32>
    %28 = arith.mulf %24, %27 : vector<32x128xf32>
    %c0_13 = arith.constant 0 : index
    %c0_14 = arith.constant 0 : index
    %29 = vector.load %arg2[%c0_13, %c0_14] : memref<32x384xf32, #tpu.memory_space<vmem>>, vector<32x384xf32>
    %c0_15 = arith.constant 0 : index
    %c0_16 = arith.constant 0 : index
    %30 = vector.load %arg3[%c0_15, %c0_16] : memref<32x384xf32, #tpu.memory_space<vmem>>, vector<32x384xf32>
    %31 = arith.subf %29, %30 : vector<32x384xf32>
    %32 = math.absf %31 : vector<32x384xf32>
    %c0_17 = arith.constant 0 : index
    %c0_18 = arith.constant 0 : index
    %33 = vector.load %arg8[%c0_17, %c0_18] : memref<384x128xf32, #tpu.memory_space<vmem>>, vector<384x128xf32>
    %cst_19 = arith.constant dense<0.000000e+00> : vector<32x128xf32>
    %34 = tpu.matmul %32, %33, %cst_19 {dimension_numbers = #tpu.dot_dimension_numbers<[1], [0], [0], [1], [0, 0, 1, 1], [], []>, precision = #tpu.contract_precision<fp32>} : vector<32x384xf32>, vector<384x128xf32>, vector<32x128xf32> -> vector<32x128xf32>
    %cst_20 = arith.constant 0.000000e+00 : f32
    %cst_21 = arith.constant 1.000000e+00 : f32
    %35 = vector.broadcast %cst_20 : f32 to vector<32x128xf32>
    %36 = arith.maximumf %35, %15 : vector<32x128xf32>
    %37 = vector.broadcast %cst_21 : f32 to vector<32x128xf32>
    %38 = arith.minimumf %37, %36 : vector<32x128xf32>
    %39 = arith.mulf %23, %38 : vector<32x128xf32>
    %40 = arith.addf %23, %38 : vector<32x128xf32>
    %c14_i32 = arith.constant 14 : i32
    %41 = vector.broadcast %c14_i32 : i32 to vector<32x128xi32>
    %42 = arith.cmpi eq, %4, %41 : vector<32x128xi32>
    %43 = arith.extui %42 : vector<32x128xi1> to vector<32x128xi32>
    %44 = arith.sitofp %43 : vector<32x128xi32> to vector<32x128xf32>
    %c0_22 = arith.constant 0 : index
    %c0_23 = arith.constant 0 : index
    %c0_24 = arith.constant 0 : index
    %45 = vector.load %arg10[%c0_22, %c0_23, %c0_24] : memref<7x32x128xf32, #tpu.memory_space<vmem>>, vector<1x32x128xf32>
    %46 = vector.shape_cast %45 : vector<1x32x128xf32> to vector<32x128xf32>
    %47 = arith.mulf %34, %28 : vector<32x128xf32>
    %48 = arith.addf %46, %47 : vector<32x128xf32>
    %c0_25 = arith.constant 0 : index
    %c0_26 = arith.constant 0 : index
    %c0_27 = arith.constant 0 : index
    %49 = vector.load %arg10[%c0_25, %c0_26, %c0_27] : memref<7x32x128xf32, #tpu.memory_space<vmem>>, vector<1x32x128xf32>
    %50 = vector.shape_cast %49 : vector<1x32x128xf32> to vector<32x128xf32>
    %51 = vector.shape_cast %48 : vector<32x128xf32> to vector<1x32x128xf32>
    tpu.vector_store %arg10[%c0_25, %c0_26, %c0_27], %51 {strides = array<i32>} : memref<7x32x128xf32, #tpu.memory_space<vmem>>, vector<1x32x128xf32>,
    %c1 = arith.constant 1 : index
    %c0_28 = arith.constant 0 : index
    %c0_29 = arith.constant 0 : index
    %52 = vector.load %arg10[%c1, %c0_28, %c0_29] : memref<7x32x128xf32, #tpu.memory_space<vmem>>, vector<1x32x128xf32>
    %53 = vector.shape_cast %52 : vector<1x32x128xf32> to vector<32x128xf32>
    %54 = arith.addf %53, %39 : vector<32x128xf32>
    %c1_30 = arith.constant 1 : index
    %c0_31 = arith.constant 0 : index
    %c0_32 = arith.constant 0 : index
    %55 = vector.load %arg10[%c1_30, %c0_31, %c0_32] : memref<7x32x128xf32, #tpu.memory_space<vmem>>, vector<1x32x128xf32>
    %56 = vector.shape_cast %55 : vector<1x32x128xf32> to vector<32x128xf32>
    %57 = vector.shape_cast %54 : vector<32x128xf32> to vector<1x32x128xf32>
    tpu.vector_store %arg10[%c1_30, %c0_31, %c0_32], %57 {strides = array<i32>} : memref<7x32x128xf32, #tpu.memory_space<vmem>>, vector<1x32x128xf32>,
    %c2 = arith.constant 2 : index
    %c0_33 = arith.constant 0 : index
    %c0_34 = arith.constant 0 : index
    %58 = vector.load %arg10[%c2, %c0_33, %c0_34] : memref<7x32x128xf32, #tpu.memory_space<vmem>>, vector<1x32x128xf32>
    %59 = vector.shape_cast %58 : vector<1x32x128xf32> to vector<32x128xf32>
    %60 = arith.addf %59, %40 : vector<32x128xf32>
    %c2_35 = arith.constant 2 : index
    %c0_36 = arith.constant 0 : index
    %c0_37 = arith.constant 0 : index
    %61 = vector.load %arg10[%c2_35, %c0_36, %c0_37] : memref<7x32x128xf32, #tpu.memory_space<vmem>>, vector<1x32x128xf32>
    %62 = vector.shape_cast %61 : vector<1x32x128xf32> to vector<32x128xf32>
    %63 = vector.shape_cast %60 : vector<32x128xf32> to vector<1x32x128xf32>
    tpu.vector_store %arg10[%c2_35, %c0_36, %c0_37], %63 {strides = array<i32>} : memref<7x32x128xf32, #tpu.memory_space<vmem>>, vector<1x32x128xf32>,
    %c3 = arith.constant 3 : index
    %c0_38 = arith.constant 0 : index
    %c0_39 = arith.constant 0 : index
    %64 = vector.load %arg10[%c3, %c0_38, %c0_39] : memref<7x32x128xf32, #tpu.memory_space<vmem>>, vector<1x32x128xf32>
    %65 = vector.shape_cast %64 : vector<1x32x128xf32> to vector<32x128xf32>
    %66 = arith.mulf %39, %44 : vector<32x128xf32>
    %67 = arith.addf %65, %66 : vector<32x128xf32>
    %c3_40 = arith.constant 3 : index
    %c0_41 = arith.constant 0 : index
    %c0_42 = arith.constant 0 : index
    %68 = vector.load %arg10[%c3_40, %c0_41, %c0_42] : memref<7x32x128xf32, #tpu.memory_space<vmem>>, vector<1x32x128xf32>
    %69 = vector.shape_cast %68 : vector<1x32x128xf32> to vector<32x128xf32>
    %70 = vector.shape_cast %67 : vector<32x128xf32> to vector<1x32x128xf32>
    tpu.vector_store %arg10[%c3_40, %c0_41, %c0_42], %70 {strides = array<i32>} : memref<7x32x128xf32, #tpu.memory_space<vmem>>, vector<1x32x128xf32>,
    %c4 = arith.constant 4 : index
    %c0_43 = arith.constant 0 : index
    %c0_44 = arith.constant 0 : index
    %71 = vector.load %arg10[%c4, %c0_43, %c0_44] : memref<7x32x128xf32, #tpu.memory_space<vmem>>, vector<1x32x128xf32>
    %72 = vector.shape_cast %71 : vector<1x32x128xf32> to vector<32x128xf32>
    %73 = arith.mulf %40, %44 : vector<32x128xf32>
    %74 = arith.addf %72, %73 : vector<32x128xf32>
    %c4_45 = arith.constant 4 : index
    %c0_46 = arith.constant 0 : index
    %c0_47 = arith.constant 0 : index
    %75 = vector.load %arg10[%c4_45, %c0_46, %c0_47] : memref<7x32x128xf32, #tpu.memory_space<vmem>>, vector<1x32x128xf32>
    %76 = vector.shape_cast %75 : vector<1x32x128xf32> to vector<32x128xf32>
    %77 = vector.shape_cast %74 : vector<32x128xf32> to vector<1x32x128xf32>
    tpu.vector_store %arg10[%c4_45, %c0_46, %c0_47], %77 {strides = array<i32>} : memref<7x32x128xf32, #tpu.memory_space<vmem>>, vector<1x32x128xf32>,
    %c5 = arith.constant 5 : index
    %c0_48 = arith.constant 0 : index
    %c0_49 = arith.constant 0 : index
    %78 = vector.load %arg10[%c5, %c0_48, %c0_49] : memref<7x32x128xf32, #tpu.memory_space<vmem>>, vector<1x32x128xf32>
    %79 = vector.shape_cast %78 : vector<1x32x128xf32> to vector<32x128xf32>
    %80 = arith.addf %79, %44 : vector<32x128xf32>
    %c5_50 = arith.constant 5 : index
    %c0_51 = arith.constant 0 : index
    %c0_52 = arith.constant 0 : index
    %81 = vector.load %arg10[%c5_50, %c0_51, %c0_52] : memref<7x32x128xf32, #tpu.memory_space<vmem>>, vector<1x32x128xf32>
    %82 = vector.shape_cast %81 : vector<1x32x128xf32> to vector<32x128xf32>
    %83 = vector.shape_cast %80 : vector<32x128xf32> to vector<1x32x128xf32>
    tpu.vector_store %arg10[%c5_50, %c0_51, %c0_52], %83 {strides = array<i32>} : memref<7x32x128xf32, #tpu.memory_space<vmem>>, vector<1x32x128xf32>,
    %c6 = arith.constant 6 : index
    %c0_53 = arith.constant 0 : index
    %c0_54 = arith.constant 0 : index
    %84 = vector.load %arg10[%c6, %c0_53, %c0_54] : memref<7x32x128xf32, #tpu.memory_space<vmem>>, vector<1x32x128xf32>
    %85 = vector.shape_cast %84 : vector<1x32x128xf32> to vector<32x128xf32>
    %86 = arith.addf %85, %24 : vector<32x128xf32>
    %c6_55 = arith.constant 6 : index
    %c0_56 = arith.constant 0 : index
    %c0_57 = arith.constant 0 : index
    %87 = vector.load %arg10[%c6_55, %c0_56, %c0_57] : memref<7x32x128xf32, #tpu.memory_space<vmem>>, vector<1x32x128xf32>
    %88 = vector.shape_cast %87 : vector<1x32x128xf32> to vector<32x128xf32>
    %89 = vector.shape_cast %86 : vector<32x128xf32> to vector<1x32x128xf32>
    tpu.vector_store %arg10[%c6_55, %c0_56, %c0_57], %89 {strides = array<i32>} : memref<7x32x128xf32, #tpu.memory_space<vmem>>, vector<1x32x128xf32>,
    %c0_i32_58 = arith.constant 0 : i32
    %90 = arith.cmpi eq, %arg1, %c0_i32_58 : i32
    %91 = arith.extui %90 : i1 to i32
    %c0_i32_59 = arith.constant 0 : i32
    %92 = arith.cmpi ne, %91, %c0_i32_59 : i32
    scf.if %92 {
      %c0_60 = arith.constant 0 : index
      %c0_61 = arith.constant 0 : index
      %c0_62 = arith.constant 0 : index
      %93 = vector.load %arg10[%c0_60, %c0_61, %c0_62] : memref<7x32x128xf32, #tpu.memory_space<vmem>>, vector<1x32x128xf32>
      %94 = vector.shape_cast %93 : vector<1x32x128xf32> to vector<32x128xf32>
      %95 = vector.shape_cast %94 : vector<32x128xf32> to vector<1x32x128xf32>
      %cst_63 = arith.constant dense<0.000000e+00> : vector<1xf32>
      %96 = vector.multi_reduction <add>, %95, %cst_63 [1, 2] : vector<1x32x128xf32> to vector<1xf32>
      %97 = vector.shape_cast %96 : vector<1xf32> to vector<1x1x1xf32>
      %98 = vector.extract %97[0, 0, 0] : f32 from vector<1x1x1xf32>
      %99 = vector.broadcast %98 : f32 to vector<1x1xf32>
      %c1_64 = arith.constant 1 : index
      %c0_65 = arith.constant 0 : index
      %c0_66 = arith.constant 0 : index
      %100 = vector.load %arg10[%c1_64, %c0_65, %c0_66] : memref<7x32x128xf32, #tpu.memory_space<vmem>>, vector<1x32x128xf32>
      %101 = vector.shape_cast %100 : vector<1x32x128xf32> to vector<32x128xf32>
      %102 = vector.shape_cast %101 : vector<32x128xf32> to vector<1x32x128xf32>
      %cst_67 = arith.constant dense<0.000000e+00> : vector<1xf32>
      %103 = vector.multi_reduction <add>, %102, %cst_67 [1, 2] : vector<1x32x128xf32> to vector<1xf32>
      %104 = vector.shape_cast %103 : vector<1xf32> to vector<1x1x1xf32>
      %105 = vector.extract %104[0, 0, 0] : f32 from vector<1x1x1xf32>
      %106 = vector.broadcast %105 : f32 to vector<1x1xf32>
      %c2_68 = arith.constant 2 : index
      %c0_69 = arith.constant 0 : index
      %c0_70 = arith.constant 0 : index
      %107 = vector.load %arg10[%c2_68, %c0_69, %c0_70] : memref<7x32x128xf32, #tpu.memory_space<vmem>>, vector<1x32x128xf32>
      %108 = vector.shape_cast %107 : vector<1x32x128xf32> to vector<32x128xf32>
      %109 = vector.shape_cast %108 : vector<32x128xf32> to vector<1x32x128xf32>
      %cst_71 = arith.constant dense<0.000000e+00> : vector<1xf32>
      %110 = vector.multi_reduction <add>, %109, %cst_71 [1, 2] : vector<1x32x128xf32> to vector<1xf32>
      %111 = vector.shape_cast %110 : vector<1xf32> to vector<1x1x1xf32>
      %112 = vector.extract %111[0, 0, 0] : f32 from vector<1x1x1xf32>
      %113 = vector.broadcast %112 : f32 to vector<1x1xf32>
      %c3_72 = arith.constant 3 : index
      %c0_73 = arith.constant 0 : index
      %c0_74 = arith.constant 0 : index
      %114 = vector.load %arg10[%c3_72, %c0_73, %c0_74] : memref<7x32x128xf32, #tpu.memory_space<vmem>>, vector<1x32x128xf32>
      %115 = vector.shape_cast %114 : vector<1x32x128xf32> to vector<32x128xf32>
      %116 = vector.shape_cast %115 : vector<32x128xf32> to vector<1x32x128xf32>
      %cst_75 = arith.constant dense<0.000000e+00> : vector<1xf32>
      %117 = vector.multi_reduction <add>, %116, %cst_75 [1, 2] : vector<1x32x128xf32> to vector<1xf32>
      %118 = vector.shape_cast %117 : vector<1xf32> to vector<1x1x1xf32>
      %119 = vector.extract %118[0, 0, 0] : f32 from vector<1x1x1xf32>
      %120 = vector.broadcast %119 : f32 to vector<1x1xf32>
      %c4_76 = arith.constant 4 : index
      %c0_77 = arith.constant 0 : index
      %c0_78 = arith.constant 0 : index
      %121 = vector.load %arg10[%c4_76, %c0_77, %c0_78] : memref<7x32x128xf32, #tpu.memory_space<vmem>>, vector<1x32x128xf32>
      %122 = vector.shape_cast %121 : vector<1x32x128xf32> to vector<32x128xf32>
      %123 = vector.shape_cast %122 : vector<32x128xf32> to vector<1x32x128xf32>
      %cst_79 = arith.constant dense<0.000000e+00> : vector<1xf32>
      %124 = vector.multi_reduction <add>, %123, %cst_79 [1, 2] : vector<1x32x128xf32> to vector<1xf32>
      %125 = vector.shape_cast %124 : vector<1xf32> to vector<1x1x1xf32>
      %126 = vector.extract %125[0, 0, 0] : f32 from vector<1x1x1xf32>
      %127 = vector.broadcast %126 : f32 to vector<1x1xf32>
      %c5_80 = arith.constant 5 : index
      %c0_81 = arith.constant 0 : index
      %c0_82 = arith.constant 0 : index
      %128 = vector.load %arg10[%c5_80, %c0_81, %c0_82] : memref<7x32x128xf32, #tpu.memory_space<vmem>>, vector<1x32x128xf32>
      %129 = vector.shape_cast %128 : vector<1x32x128xf32> to vector<32x128xf32>
      %130 = vector.shape_cast %129 : vector<32x128xf32> to vector<1x32x128xf32>
      %cst_83 = arith.constant dense<0.000000e+00> : vector<1xf32>
      %131 = vector.multi_reduction <add>, %130, %cst_83 [1, 2] : vector<1x32x128xf32> to vector<1xf32>
      %132 = vector.shape_cast %131 : vector<1xf32> to vector<1x1x1xf32>
      %133 = vector.extract %132[0, 0, 0] : f32 from vector<1x1x1xf32>
      %134 = vector.broadcast %133 : f32 to vector<1x1xf32>
      %c6_84 = arith.constant 6 : index
      %c0_85 = arith.constant 0 : index
      %c0_86 = arith.constant 0 : index
      %135 = vector.load %arg10[%c6_84, %c0_85, %c0_86] : memref<7x32x128xf32, #tpu.memory_space<vmem>>, vector<1x32x128xf32>
      %136 = vector.shape_cast %135 : vector<1x32x128xf32> to vector<32x128xf32>
      %137 = vector.shape_cast %136 : vector<32x128xf32> to vector<1x32x128xf32>
      %cst_87 = arith.constant dense<0.000000e+00> : vector<1xf32>
      %138 = vector.multi_reduction <add>, %137, %cst_87 [1, 2] : vector<1x32x128xf32> to vector<1xf32>
      %139 = vector.shape_cast %138 : vector<1xf32> to vector<1x1x1xf32>
      %140 = vector.extract %139[0, 0, 0] : f32 from vector<1x1x1xf32>
      %141 = vector.broadcast %140 : f32 to vector<1x1xf32>
      %cst_88 = arith.constant 0.000000e+00 : f32
      %142 = vector.broadcast %cst_88 : f32 to vector<1x1xf32>
      %143 = tpu.concatenate %99, %106, %113, %120, %127, %134, %141, %142 in 1 : vector<1x1xf32>, vector<1x1xf32>, vector<1x1xf32>, vector<1x1xf32>, vector<1x1xf32>, vector<1x1xf32>, vector<1x1xf32>, vector<1x1xf32> -> vector<1x8xf32>
      %c0_89 = arith.constant 0 : index
      %c0_90 = arith.constant 0 : index
      %c0_91 = arith.constant 0 : index
      %144 = vector.load %arg9[%c0_89, %c0_90, %c0_91] : memref<1x1x8xf32, #tpu.memory_space<vmem>>, vector<1x1x8xf32>
      %145 = vector.shape_cast %144 : vector<1x1x8xf32> to vector<1x8xf32>
      %146 = vector.shape_cast %143 : vector<1x8xf32> to vector<1x1x8xf32>
      tpu.vector_store %arg9[%c0_89, %c0_90, %c0_91], %146 {strides = array<i32>} : memref<1x1x8xf32, #tpu.memory_space<vmem>>, vector<1x1x8xf32>,
    } else {
    }
    return
  }
  func.func @transform_0(%arg0: i32, %arg1: i32) -> (i32, i32) {
    %c1_i32 = arith.constant 1 : i32
    %0 = arith.muli %arg0, %c1_i32 : i32
    %1 = arith.addi %0, %arg1 : i32
    %c0_i32 = arith.constant 0 : i32
    %c0_i32_0 = arith.constant 0 : i32
    return %1, %c0_i32 : i32, i32
  }
  func.func @transform_1(%arg0: i32, %arg1: i32) -> (i32, i32) {
    %c1_i32 = arith.constant 1 : i32
    %0 = arith.muli %arg0, %c1_i32 : i32
    %1 = arith.addi %0, %arg1 : i32
    %c0_i32 = arith.constant 0 : i32
    %c0_i32_0 = arith.constant 0 : i32
    return %1, %c0_i32 : i32, i32
  }
  func.func @transform_2(%arg0: i32, %arg1: i32) -> (i32, i32) {
    %c1_i32 = arith.constant 1 : i32
    %0 = arith.muli %arg0, %c1_i32 : i32
    %1 = arith.addi %0, %arg1 : i32
    %c0_i32 = arith.constant 0 : i32
    %c0_i32_0 = arith.constant 0 : i32
    return %1, %c0_i32 : i32, i32
  }
  func.func @transform_3(%arg0: i32, %arg1: i32) -> (i32, i32) {
    %c1_i32 = arith.constant 1 : i32
    %0 = arith.muli %arg0, %c1_i32 : i32
    %1 = arith.addi %0, %arg1 : i32
    %c0_i32 = arith.constant 0 : i32
    %c0_i32_0 = arith.constant 0 : i32
    return %1, %c0_i32 : i32, i32
  }
  func.func @transform_4(%arg0: i32, %arg1: i32) -> (i32, i32) {
    %c1_i32 = arith.constant 1 : i32
    %0 = arith.muli %arg0, %c1_i32 : i32
    %1 = arith.addi %0, %arg1 : i32
    %c0_i32 = arith.constant 0 : i32
    %c0_i32_0 = arith.constant 0 : i32
    return %1, %c0_i32 : i32, i32
  }
  func.func @transform_5(%arg0: i32, %arg1: i32) -> (i32, i32) {
    %c1_i32 = arith.constant 1 : i32
    %0 = arith.muli %arg0, %c1_i32 : i32
    %1 = arith.addi %0, %arg1 : i32
    %c0_i32 = arith.constant 0 : i32
    %c0_i32_0 = arith.constant 0 : i32
    return %1, %c0_i32 : i32, i32
  }
  func.func @transform_6(%arg0: i32, %arg1: i32) -> (i32, i32) {
    %c0_i32 = arith.constant 0 : i32
    %c0_i32_0 = arith.constant 0 : i32
    %c0_i32_1 = arith.constant 0 : i32
    return %c0_i32, %c0_i32_0 : i32, i32
  }
  func.func @transform_7(%arg0: i32, %arg1: i32) -> (i32, i32, i32) {
    %c0_i32 = arith.constant 0 : i32
    %c0_i32_0 = arith.constant 0 : i32
    %c0_i32_1 = arith.constant 0 : i32
    return %arg0, %c0_i32, %c0_i32_0 : i32, i32, i32
  }
}

</mosaic_0001>

<bundles_post_ra>
// kernel: _image_space_reductions.1
= control target key start
LH: loop header
LB: loop body
LE: loop exit
PB: predicated region body
PF: predicated region fallthrough
CT: control target
= control target key end

     0   :  { %s3563_s24 = smov 0   ;;  %s3565_s25 = smov 0   ;;  %s5039_s0 = inlined_call_operand.vmem [shape: f32[64,384], index: 0, kind: input, shape index: {}]   ;;  %s5040_s1 = inlined_call_operand.vmem [shape: f32[64,384], index: 1, kind: input, shape index: {}]   ;;  %s5041_s2 = inlined_call_operand.vmem [shape: s8[64,128], index: 2, kind: input, shape index: {}]   ;;  %s5042_s3 = inlined_call_operand.vmem [shape: s8[64,128], index: 3, kind: input, shape index: {}]   ;;  %s5043_s4 = inlined_call_operand.vmem [shape: s8[64,128], index: 4, kind: input, shape index: {}]   ;;  %s5044_s5 = inlined_call_operand.vmem [shape: f32[64,128], index: 5, kind: input, shape index: {}]   ;;  %s5045_s6 = inlined_call_operand.vmem [shape: f32[384,128], index: 6, kind: input, shape index: {}]   ;;  %s5046_s7 = inlined_call_operand.vmem [shape: f32[2,1,8], index: 7, kind: output, shape index: {}]  }
   0x1   :  { %s3567_s26 = smov 0  }
   0x2 LB: > { %s29_s27 = sadd.s32 1, %s3514_s25  ;;  %p2818_p0 = scmp.ge.s32.totalorder %s3518_s26, 1  ;;  %s3518_s26 = sphi %s3567_s26, %s17_s26   ;;  %s3514_s25 = sphi %s3565_s25, %s5362_s25   ;;  %s3510_s24 = sphi %s3563_s24, %s5361_s24  }
   0x3   : > { %p31_p1 = scmp.ge.s32.totalorder %s29_s27, 2  ;;  %p325_p2 = scmp.lt.s32.totalorder %s3518_s26, 3 }
   0x5   : > { %s5364_s27 = smov (%p31_p1, %s29_s27), 0  ;;  %p326_p3 = pnand %p2818_p0, %p325_p2 }
   0x7   : > { %329 = sbr.rel (%p326_p3) target bundleno = 675 (0x2a3), region = 48 }
   0xc   : > { %v614_v0 = vld [vmem:[%s5045_s6 + $0xf8] sm:$0xff]  ;;  %v613_v2 = vld [vmem:[%s5045_s6 + $0xf0] sm:$0xff]  ;;  %v612_v7 = vld [vmem:[%s5045_s6 + $0xe8] sm:$0xff]  ;;  %s2819_s28 = sshll.u32 %s3510_s24, 2  ;;  %p404_p5 = scmp.lt.s32.totalorder %s3510_s24, 1  ;;  %vm3520_vm5 = vmmov 1  }
   0xd   : > { %v598_v1 = vld [vmem:[%s5045_s6 + $0x78] sm:$0xff]  ;;  %v3592_v3 = vand.u32 4294901760, %v614_v0  ;;  %v3596_v5 = vand.u32 4294901760, %v613_v2  ;;  %v597_v6 = vld [vmem:[%s5045_s6 + $0x70] sm:$0xff]  ;;  %v596_v8 = vld [vmem:[%s5045_s6 + $0x68] sm:$0xff]  ;;  %v3609_v10 = vand.u32 4294901760, %v612_v7 }
   0xe   : > { %v3594_v4 = vand.u32 4294901760, %v598_v1  ;;  %v3607_v9 = vand.u32 4294901760, %v597_v6  ;;  %v3611_v11 = vand.u32 4294901760, %v596_v8  ;;  %v611_v12 = vld [vmem:[%s5045_s6 + $0xe0] sm:$0xff]  ;;  %v3622_v14 = vld [vmem:[%s5045_s6 + $0xd8] sm:$0xff]  ;;  %v3643_v20 = vld [vmem:[%s5045_s6 + $0xd0] sm:$0xff] }
   0xf   : > { %v595_v13 = vld [vmem:[%s5045_s6 + $0x60] sm:$0xff]  ;;  %2842 = vmatprep.subr.mxu0 %v3592_v3  ;;  %v3625_v15 = vand.u32 4294901760, %v611_v12  ;;  %v3630_v17 = vand.u32 4294901760, %v3622_v14  ;;  %v3633_v18 = vsub.f32 %v614_v0, %v3592_v3  ;;  %v3638_v19 = vld [vmem:[%s5045_s6 + $0x58] sm:$0xff]  ;;  %v3648_v21 = vld [vmem:[%s5045_s6 + $0x50] sm:$0xff]  ;;  %v3658_v24 = vand.u32 4294901760, %v3643_v20 }
  0x10   : > { %v3627_v16 = vand.u32 4294901760, %v595_v13  ;;  %2843 = vmatpush3.msra.mxu0 %v3594_v4  ;;  %v3652_v22 = vand.u32 4294901760, %v3638_v19  ;;  %v3655_v23 = vsub.f32 %v598_v1, %v3594_v4  ;;  %v3661_v25 = vsub.f32 %v613_v2, %v3596_v5  ;;  %v3666_v26 = vld [vmem:[%s5045_s6 + $0xc8] sm:$0xff]  ;;  %v3676_v28 = vld [vmem:[%s5045_s6 + $0xc0] sm:$0xff]  ;;  %v3728_v46 = vld [vmem:[%s5045_s6 + $0xb8] sm:$0xff]  ;;  %p3801_p4 = scmp.lt.s32.totalorder %s2819_s28, 7 }
  0x11   : > { %5169 = vst [vmem:[#allocation3_spill] sm:$0xff] %v3633_v18  ;;  %5170 = vst [vmem:[#allocation4_spill] sm:$0xff] %v3658_v24  ;;  %v3671_v27 = vld [vmem:[%s5045_s6 + $0x48] sm:$0xff]  ;;  %2844 = vmatprep.subr.mxu0 %v3596_v5  ;;  %v5060_v29 = vand.u32 4294901760, %v3633_v18  ;;  %v3681_v30 = vand.u32 4294901760, %v3648_v21  ;;  %v3684_v31 = vsub.f32 %v597_v6, %v3607_v9  ;;  %v3687_v32 = vand.u32 4294901760, %v3666_v26 }
  0x12   : > { %2845 = vmatpush3.msra.mxu0 %v3607_v9  ;;  %v5059_v33 = vand.u32 4294901760, %v3655_v23  ;;  %v5058_v34 = vand.u32 4294901760, %v3661_v25  ;;  %v3693_v35 = vsub.f32 %v612_v7, %v3609_v10  ;;  %v3696_v36 = vand.u32 4294901760, %v3671_v27  ;;  %v3701_v37 = vld [vmem:[%s5045_s6 + $0x40] sm:$0xff]  ;;  %v3741_v51 = vld [vmem:[%s5045_s6 + $0x38] sm:$0xff]  ;;  %v3751_v56 = vld [vmem:[%s5045_s6 + $0xb0] sm:$0xff] }
  0x13   : > { %5171 = vst [vmem:[#allocation5_spill] sm:$0xff] %v3681_v30  ;;  %5172 = vst [vmem:[#allocation6_spill] sm:$0xff] %v3687_v32  ;;  %2846 = vmatprep.subr.mxu0 %v3609_v10  ;;  %v904_v38 = vsub.f32 %v3633_v18, %v5060_v29  ;;  %v5056_v39 = vand.u32 4294901760, %v3684_v31  ;;  %v3709_v40 = vsub.f32 %v596_v8, %v3611_v11  ;;  %v3712_v41 = vand.u32 4294901760, %v3676_v28  ;;  %v3767_v61 = vld [vmem:[%s5045_s6 + $0x30] sm:$0xff]  ;;  %v3783_v2 = vld [vmem:[%s5045_s6 + $0xa8] sm:$0xff] }
  0x14   : > { %5173 = vst [vmem:[#allocation7_spill] sm:$0xff] %v3696_v36  ;;  %2847 = vmatpush3.msra.mxu0 %v3611_v11  ;;  %v792_v42 = vsub.f32 %v3655_v23, %v5059_v33  ;;  %v911_v43 = vsub.f32 %v3661_v25, %v5058_v34  ;;  %v5054_v44 = vand.u32 4294901760, %v3693_v35  ;;  %v3723_v45 = vsub.f32 %v611_v12, %v3625_v15  ;;  %s5366_s28 = smov (!%p3801_p4, %s2819_s28), 7  ;;  %v3932_v33 = vld [vmem:[%s5045_s6 + $0x88] sm:$0xff]  ;;  %s5368_s24 = smov (!%p404_p5, %s3510_s24), 1 }
  0x15   : > { %5174 = vst [vmem:[#allocation8_spill] sm:$0xff] %v3712_v41  ;;  %2848 = vmatprep.subr.mxu0 %v3625_v15  ;;  %v905_v47 = vand.u32 4294901760, %v904_v38  ;;  %v799_v48 = vsub.f32 %v3684_v31, %v5056_v39  ;;  %v5052_v49 = vand.u32 4294901760, %v3709_v40  ;;  %v3736_v50 = vand.u32 4294901760, %v3701_v37  ;;  %s3454_s30 = smul.u32 24, %s5366_s28  ;;  %s2823_s18 = sshll.u32 %s5368_s24, 3 }
  0x16   : > { %2849 = vmatpush3.msra.mxu0 %v3627_v16  ;;  %v793_v52 = vand.u32 4294901760, %v792_v42  ;;  %v912_v53 = vand.u32 4294901760, %v911_v43  ;;  %v918_v54 = vsub.f32 %v3693_v35, %v5054_v44  ;;  %v5051_v55 = vand.u32 4294901760, %v3723_v45  ;;  %v3904_v44 = vld [vmem:[%s5045_s6 + $0x90] sm:$0xff]  ;;  %s407_s21 = scalar_lea.vmem %s5041_s2, %s2823_s18  ;;  %s2827_s22 = sshll.u32 %s5366_s28, 3 }
  0x17   : > { %5175 = vst [vmem:[#allocation9_spill] sm:$0xff] %v3736_v50  ;;  %2850 = vmatprep.subr.mxu0 %v3630_v17  ;;  %2886 = vmatprep.subr.mxu1 %v905_v47  ;;  %v800_v57 = vand.u32 4294901760, %v799_v48  ;;  %v806_v58 = vsub.f32 %v3709_v40, %v5052_v49  ;;  %v3759_v59 = vsub.f32 %v595_v13, %v3627_v16  ;;  %v3762_v60 = vand.u32 4294901760, %v3728_v46  ;;  %v3797_v13 = vld [vmem:[%s5045_s6 + $0x28] sm:$0xff]  ;;  %v3888_v49 = vld [vmem:[%s5045_s6 + $0x18] sm:$0xff]  ;;  %s3981_s16 = scalar_lea.vmem %s5039_s0, %s3454_s30  ;;  %s3988_s19 = scalar_lea.vmem %s5040_s1, %s3454_s30 }
  0x18   : > { %2851 = vmatpush3.msra.mxu0 %v3652_v22  ;;  %2887 = vmatpush3.msra.mxu1 %v793_v52  ;;  %v919_v62 = vand.u32 4294901760, %v918_v54  ;;  %v925_v63 = vsub.f32 %v3723_v45, %v5051_v55  ;;  %v3775_v0 = vsub.f32 %v3622_v14, %v3630_v17  ;;  %v3778_v1 = vand.u32 4294901760, %v3741_v51  ;;  %v3829_v52 = vld [vmem:[%s5045_s6 + $0xa0] sm:$0xff]  ;;  %s4907_s30 = scalar_lea.vmem %s5044_s5, %s2827_s22  ;;  %s413_s10 = scalar_lea.vmem %s5042_s3, %s2823_s18 }
  0x19   : > { %5176 = vst [vmem:[#allocation10_spill] sm:$0xff] %v3762_v60  ;;  %2852 = vmatprep.subr.mxu0 %v3658_v24  ;;  %2888 = vmatprep.subr.mxu1 %v912_v53  ;;  %v807_v6 = vand.u32 4294901760, %v806_v58  ;;  %v5049_v7 = vand.u32 4294901760, %v3759_v59  ;;  %v3789_v8 = vsub.f32 %v3638_v19, %v3652_v22  ;;  %v3792_v12 = vand.u32 4294901760, %v3751_v56  ;;  %s419_s12 = scalar_lea.vmem %s5043_s4, %s2823_s18  ;;  %s431_s22 = scalar_lea.vmem %s5046_s7, %s5368_s24 }
  0x1a   : > { %5177 = vst [vmem:[#allocation11_spill] sm:$0xff] %v3778_v1  ;;  %2853 = vmatpush3.msra.mxu0 %v3681_v30  ;;  %2889 = vmatpush3.msra.mxu1 %v800_v57  ;;  %v926_v14 = vand.u32 4294901760, %v925_v63  ;;  %v5048_v19 = vand.u32 4294901760, %v3775_v0  ;;  %v3809_v38 = vsub.f32 %v3643_v20, %v3658_v24  ;;  %v3812_v42 = vand.u32 4294901760, %v3767_v61 }
  0x1b   : > { %5178 = vst [vmem:[#allocation12_spill] sm:$0xff] %v3792_v12  ;;  %2854 = vmatprep.subr.mxu0 %v3687_v32  ;;  %2890 = vmatprep.subr.mxu1 %v919_v62  ;;  %v813_v43 = vsub.f32 %v3759_v59, %v5049_v7  ;;  %v5047_v47 = vand.u32 4294901760, %v3789_v8  ;;  %v3821_v48 = vsub.f32 %v3648_v21, %v3681_v30  ;;  %v3824_v20 = vand.u32 4294901760, %v3783_v2 }
  0x1c   : > { %5180 = vst [vmem:[#allocation13_spill] sm:$0xff] %v3812_v42  ;;  %2855 = vmatpush3.msra.mxu0 %v3696_v36  ;;  %2891 = vmatpush3.msra.mxu1 %v807_v6  ;;  %v932_v53 = vsub.f32 %v3775_v0, %v5048_v19  ;;  %v5050_v21 = vand.u32 4294901760, %v3809_v38  ;;  %v3838_v54 = vsub.f32 %v3666_v26, %v3687_v32  ;;  %v3841_v57 = vand.u32 4294901760, %v3797_v13  ;;  %v3855_v26 = vld [vmem:[%s5045_s6 + $0x20] sm:$0xff]  ;;  %v3874_v19 = vld [vmem:[%s5045_s6 + $0x98] sm:$0xff] }
  0x1d   : > { %5181 = vst [vmem:[#allocation14_spill] sm:$0xff] %v3824_v20  ;;  %2856 = vmatprep.subr.mxu0 %v3712_v41  ;;  %2892 = vmatprep.subr.mxu1 %v926_v14  ;;  %v814_v58 = vand.u32 4294901760, %v813_v43  ;;  %v820_v62 = vsub.f32 %v3789_v8, %v5047_v47  ;;  %v5053_v63 = vand.u32 4294901760, %v3821_v48  ;;  %v3850_v6 = vsub.f32 %v3671_v27, %v3696_v36 }
  0x1e   : > { %5182 = vst [vmem:[#allocation15_spill] sm:$0xff] %v3841_v57  ;;  %2857 = vmatpush3.msra.mxu0 %v3736_v50  ;;  %v933_v14 = vand.u32 4294901760, %v932_v53  ;;  %v939_v43 = vsub.f32 %v3809_v38, %v5050_v21  ;;  %v5055_v47 = vand.u32 4294901760, %v3838_v54  ;;  %v3869_v27 = vand.u32 4294901760, %v3829_v52 }
  0x1f   : > { %2893 = vmatpush3.msra.mxu1 %v814_v58  ;;  %2858 = vmatprep.subr.mxu0 %v3762_v60  ;;  %v821_v7 = vand.u32 4294901760, %v820_v62  ;;  %v827_v53 = vsub.f32 %v3821_v48, %v5053_v63  ;;  %v5057_v21 = vand.u32 4294901760, %v3850_v6  ;;  %v3883_v55 = vsub.f32 %v3676_v28, %v3712_v41 }
  0x20   : > { %5183 = vst [vmem:[#allocation16_spill] sm:$0xff] %v3869_v27  ;;  %2894 = vmatprep.subr.mxu1 %v933_v14  ;;  %2859 = vmatpush3.msra.mxu0 %v3778_v1  ;;  %v940_v58 = vand.u32 4294901760, %v939_v43  ;;  %v946_v62 = vsub.f32 %v3838_v54, %v5055_v47  ;;  %v3895_v63 = vand.u32 4294901760, %v3855_v26  ;;  %v3899_v28 = vsub.f32 %v3701_v37, %v3736_v50  ;;  %v3917_v37 = vld [vmem:[%s5045_s6 + $0x10] sm:$0xff] }
  0x21   : > { %2895 = vmatpush3.msra.mxu1 %v821_v7  ;;  %2860 = vmatprep.subr.mxu0 %v3792_v12  ;;  %v828_v14 = vand.u32 4294901760, %v827_v53  ;;  %v834_v43 = vsub.f32 %v3850_v6, %v5057_v21  ;;  %v5061_v47 = vand.u32 4294901760, %v3883_v55  ;;  %v3912_v39 = vand.u32 4294901760, %v3874_v19 }
  0x22   : > { %5184 = vst [vmem:[#allocation17_spill] sm:$0xff] %v3895_v63  ;;  %2896 = vmatprep.subr.mxu1 %v940_v58  ;;  %2861 = vmatpush3.msra.mxu0 %v3812_v42  ;;  %v947_v7 = vand.u32 4294901760, %v946_v62  ;;  %v5064_v53 = vand.u32 4294901760, %v3899_v28  ;;  %v3924_v21 = vsub.f32 %v3728_v46, %v3762_v60  ;;  %v3927_v34 = vand.u32 4294901760, %v3888_v49 }
  0x23   : > { %5185 = vst [vmem:[#allocation18_spill] sm:$0xff] %v3912_v39  ;;  %2897 = vmatpush3.msra.mxu1 %v828_v14  ;;  %2862 = vmatprep.subr.mxu0 %v3824_v20  ;;  %v835_v58 = vand.u32 4294901760, %v834_v43  ;;  %v953_v62 = vsub.f32 %v3883_v55, %v5061_v47  ;;  %v3940_v46 = vsub.f32 %v3741_v51, %v3778_v1  ;;  %v3943_v29 = vand.u32 4294901760, %v3904_v44  ;;  %v3960_v1 = vld [vmem:[%s5045_s6 + $0x8] sm:$0xff] }
  0x24   : > { %5186 = vst [vmem:[#allocation19_spill] sm:$0xff] %v3924_v21  ;;  %5187 = vst [vmem:[#allocation20_spill] sm:$0xff] %v3927_v34  ;;  %2898 = vmatprep.subr.mxu1 %v947_v7  ;;  %2863 = vmatpush3.msra.mxu0 %v3841_v57  ;;  %v841_v14 = vsub.f32 %v3899_v28, %v5064_v53  ;;  %v3952_v47 = vsub.f32 %v3751_v56, %v3792_v12  ;;  %v3955_v51 = vand.u32 4294901760, %v3917_v37  ;;  %v3974_v12 = vld [vmem:[%s5045_s6 + $0x80] sm:$0xff] }
  0x25   : > { %5188 = vst [vmem:[#allocation21_spill] sm:$0xff] %v3940_v46  ;;  %5189 = vst [vmem:[#allocation22_spill] sm:$0xff] %v3943_v29  ;;  %2899 = vmatpush3.msra.mxu1 %v835_v58  ;;  %2864 = vmatprep.subr.mxu0 %v3869_v27  ;;  %v954_v7 = vand.u32 4294901760, %v953_v62  ;;  %v3966_v43 = vsub.f32 %v3767_v61, %v3812_v42  ;;  %v3969_v56 = vand.u32 4294901760, %v3932_v33  ;;  %v5194_v58 = vand.u32 4294901760, %v3924_v21 }
  0x26   : > { %5190 = vst [vmem:[#allocation23_spill] sm:$0xff] %v3952_v47  ;;  %5191 = vst [vmem:[#allocation24_spill] sm:$0xff] %v3955_v51  ;;  %2865 = vmatpush3.msra.mxu0 %v3895_v63  ;;  %v842_v61 = vand.u32 4294901760, %v841_v14  ;;  %v5085_v53 = vand.u32 4294901760, %v3952_v47  ;;  %v3997_v42 = vsub.f32 %v3783_v2, %v3824_v20  ;;  %v5196_v60 = vand.u32 4294901760, %v3940_v46  ;;  %v4014_v2 = vld [vmem:[%s5045_s6] sm:$0xff] }
  0x27   : > { %5192 = vst [vmem:[#allocation25_spill] sm:$0xff] %v3966_v43  ;;  %5193 = vst [vmem:[#allocation26_spill] sm:$0xff] %v3969_v56  ;;  %v960_v62 = vsub.f32 %v3924_v21, %v5194_v58  ;;  %2900 = vmatprep.subr.mxu1 %v954_v7  ;;  %2866 = vmatprep.subr.mxu0 %v3912_v39  ;;  %v4005_v41 = vand.u32 4294901760, %v3960_v1  ;;  %v4009_v58 = vsub.f32 %v3797_v13, %v3841_v57  ;;  %v536_v13 = vld [vmem:[%s3981_s16 + $0x8] sm:$0xff]  ;;  %v547_v14 = vld [vmem:[%s3988_s19] sm:$0xff] }
  0x28   : > { %5195 = vst [vmem:[#allocation27_spill] sm:$0xff] %v3997_v42  ;;  %v848_v50 = vsub.f32 %v3940_v46, %v5196_v60  ;;  %2901 = vmatpush3.msra.mxu1 %v842_v61  ;;  %2867 = vmatpush3.msra.mxu0 %v3927_v34  ;;  %v967_v60 = vsub.f32 %v3952_v47, %v5085_v53  ;;  %v4022_v20 = vand.u32 4294901760, %v3974_v12  ;;  %v548_v57 = vld [vmem:[%s3988_s19 + $0x8] sm:$0xff]  ;;  %v5200_v32 = vand.u32 4294901760, %v3966_v43  ;;  %v535_v53 = vld [vmem:[%s3981_s16] sm:$0xff] }
  0x29   : > { %5197 = vst [vmem:[#allocation28_spill] sm:$0xff] %v4005_v41  ;;  %5198 = vst [vmem:[#allocation29_spill] sm:$0xff] %v4009_v58  ;;  %v961_v7 = vand.u32 4294901760, %v960_v62  ;;  %2868 = vmatprep.subr.mxu0 %v3943_v29  ;;  %v5096_v62 = vand.u32 4294901760, %v4009_v58  ;;  %v4033_v30 = vsub.f32 %v3829_v52, %v3869_v27  ;;  %v4042_v21 = vand.u32 4294901760, %v4014_v2 }
  0x2a   : > { %5199 = vst [vmem:[#allocation30_spill] sm:$0xff] %v4022_v20  ;;  %v849_v36 = vand.u32 4294901760, %v848_v50  ;;  %v855_v61 = vsub.f32 %v3966_v43, %v5200_v32  ;;  %v968_v47 = vand.u32 4294901760, %v967_v60  ;;  %2869 = vmatpush3.msra.mxu0 %v3955_v51  ;;  %v5201_v50 = vand.u32 4294901760, %v3997_v42 }
  0x2b   : > { %2902 = vmatprep.subr.mxu1 %v961_v7  ;;  %5202 = vst [vmem:[#allocation31_spill] sm:$0xff] %v4042_v21  ;;  %v4046_v32 = vsub.f32 %v3855_v26, %v3895_v63  ;;  %2870 = vmatprep.subr.mxu0 %v3969_v56  ;;  %v862_v7 = vsub.f32 %v4009_v58, %v5096_v62  ;;  %v5100_v60 = vand.u32 4294901760, %v4033_v30 }
  0x2c   : > { %v974_v46 = vsub.f32 %v3997_v42, %v5201_v50  ;;  %2903 = vmatpush3.msra.mxu1 %v849_v36  ;;  %v856_v52 = vand.u32 4294901760, %v855_v61  ;;  %v560_v27 = vsub.f32 %v536_v13, %v548_v57  ;;  %2871 = vmatpush3.msra.mxu0 %v4005_v41  ;;  %v4057_v26 = vsub.f32 %v3874_v19, %v3912_v39 }
  0x2d   : > { %5203 = vst [vmem:[#allocation32_spill] sm:$0xff] %v4046_v32  ;;  %2904 = vmatprep.subr.mxu1 %v968_v47  ;;  %v5099_v42 = vand.u32 4294901760, %v4046_v32  ;;  %v559_v36 = vsub.f32 %v535_v53, %v547_v14  ;;  %v863_v61 = vand.u32 4294901760, %v862_v7  ;;  %2872 = vmatprep.subr.mxu0 %v4022_v20  ;;  %v981_v62 = vsub.f32 %v4033_v30, %v5100_v60  ;;  %v551_v60 = vld [vmem:[%s3988_s19 + $0x20] sm:$0xff] }
  0x2e   : > { %v975_v50 = vand.u32 4294901760, %v974_v46  ;;  %2905 = vmatpush3.msra.mxu1 %v856_v52  ;;  %v572_v57 = vand.u32 2147483647, %v560_v27  ;;  %v4065_v47 = vsub.f32 %v3888_v49, %v3927_v34  ;;  %2873 = vmatpush3.msra.mxu0 %v4042_v21  ;;  %v5097_v53 = vand.u32 4294901760, %v4057_v26  ;;  %v553_v34 = vld [vmem:[%s3988_s19 + $0x30] sm:$0xff] }
  0x2f   : > { %v869_v19 = vsub.f32 %v4046_v32, %v5099_v42  ;;  %v571_v46 = vand.u32 2147483647, %v559_v36  ;;  %v4074_v14 = vsub.f32 %v3904_v44, %v3943_v29  ;;  %v982_v27 = vand.u32 4294901760, %v981_v62  ;;  %2930 = vmatprep.subr.mxu0 %v3633_v18  ;;  %v541_v29 = vld [vmem:[%s3981_s16 + $0x30] sm:$0xff] }
  0x30   : > { %2906 = vmatprep.subr.mxu1 %v975_v50  ;;  %v4076_v13 = vand.u32 4294901760, %v572_v57  ;;  %v5098_v49 = vand.u32 4294901760, %v4065_v47  ;;  %v4082_v52 = vsub.f32 %v3917_v37, %v3955_v51  ;;  %v988_v50 = vsub.f32 %v4057_v26, %v5097_v53 }
  0x31   : > { %2907 = vmatpush3.msra.mxu1 %v863_v61  ;;  %v870_v7 = vand.u32 4294901760, %v869_v19  ;;  %v4087_v36 = vand.u32 4294901760, %v571_v46  ;;  %v5103_v44 = vand.u32 4294901760, %v4074_v14  ;;  %v4099_v19 = vsub.f32 %v3932_v33, %v3969_v56  ;;  %v538_v33 = vld [vmem:[%s3981_s16 + $0x18] sm:$0xff] }
  0x32   : > { %5204 = vst [vmem:[#allocation33_spill] sm:$0xff] %v4076_v13  ;;  %2908 = vmatprep.subr.mxu1 %v982_v27  ;;  %v4091_v62 = vsub.f32 %v572_v57, %v4076_v13  ;;  %v876_v37 = vsub.f32 %v4065_v47, %v5098_v49  ;;  %v5104_v61 = vand.u32 4294901760, %v4082_v52  ;;  %1013 = vmatprep.mubr.f32.mxu1 %v4076_v13  ;;  %v989_v53 = vand.u32 4294901760, %v988_v50 }
  0x33   : > { %5205 = vst [vmem:[#allocation34_spill] sm:$0xff] %v4087_v36  ;;  %2909 = vmatpush3.msra.mxu1 %v870_v7  ;;  %v4103_v27 = vsub.f32 %v571_v46, %v4087_v36  ;;  %v995_v57 = vsub.f32 %v4074_v14, %v5103_v44  ;;  %v4110_v49 = vsub.f32 %v3960_v1, %v4005_v41  ;;  %v539_v46 = vld [vmem:[%s3981_s16 + $0x20] sm:$0xff]  ;;  %v5209_v13 = vand.u32 4294901760, %v4099_v19 }
  0x34   : > { %5206 = vst [vmem:[#allocation35_spill] sm:$0xff] %v4091_v62  ;;  %v877_v42 = vand.u32 4294901760, %v876_v37  ;;  %v883_v7 = vsub.f32 %v4082_v52, %v5104_v61  ;;  %2910 = vmatprep.subr.mxu1 %v989_v53  ;;  %v4123_v37 = vsub.f32 %v3974_v12, %v4022_v20  ;;  %v550_v61 = vld [vmem:[%s3988_s19 + $0x18] sm:$0xff]  ;;  %v5208_v41 = vand.u32 4294901760, %v4091_v62 }
  0x35   : > { %5207 = vst [vmem:[#allocation36_spill] sm:$0xff] %v4103_v27  ;;  %v996_v44 = vand.u32 4294901760, %v995_v57  ;;  %v1002_v57 = vsub.f32 %v4099_v19, %v5209_v13  ;;  %v4135_v1 = vsub.f32 %v4014_v2, %v4042_v21  ;;  %v542_v12 = vld [vmem:[%s3981_s16 + $0x38] sm:$0xff]  ;;  %v5210_v20 = vand.u32 4294901760, %v4103_v27 }
  0x36   : > { %v730_v50 = vsub.f32 %v4091_v62, %v5208_v41  ;;  %2911 = vmatpush3.msra.mxu1 %v877_v42  ;;  %v884_v53 = vand.u32 4294901760, %v883_v7  ;;  %v5211_v41 = vand.u32 4294901760, %v4110_v49  ;;  %v5128_v7 = vand.u32 4294901760, %v4123_v37  ;;  %v554_v13 = vld [vmem:[%s3988_s19 + $0x38] sm:$0xff]  ;;  %v544_v62 = vld [vmem:[%s3981_s16 + $0x48] sm:$0xff] }
  0x37   : > { %v736_v56 = vsub.f32 %v4103_v27, %v5210_v20  ;;  %2912 = vmatprep.subr.mxu1 %v996_v44  ;;  %v563_v51 = vsub.f32 %v539_v46, %v551_v60  ;;  %v1003_v2 = vand.u32 4294901760, %v1002_v57  ;;  %v5129_v21 = vand.u32 4294901760, %v4135_v1  ;;  %v545_v20 = vld [vmem:[%s3981_s16 + $0x50] sm:$0xff] }
  0x38   : > { %v890_v42 = vsub.f32 %v4110_v49, %v5211_v41  ;;  %v731_v18 = vand.u32 4294901760, %v730_v50  ;;  %2913 = vmatpush3.msra.mxu1 %v884_v53  ;;  %v562_v39 = vsub.f32 %v538_v33, %v550_v61  ;;  %v557_v44 = vld [vmem:[%s3988_s19 + $0x50] sm:$0xff]  ;;  %v1009_v41 = vsub.f32 %v4123_v37, %v5128_v7  ;;  %v556_v61 = vld [vmem:[%s3988_s19 + $0x48] sm:$0xff] }
  0x39   : > { %v737_v27 = vand.u32 4294901760, %v736_v56  ;;  %v575_v60 = vand.u32 2147483647, %v563_v51  ;;  %2914 = vmatprep.subr.mxu1 %v1003_v2  ;;  %v897_v50 = vsub.f32 %v4135_v1, %v5129_v21  ;;  %v566_v53 = vsub.f32 %v542_v12, %v554_v13  ;;  %v5219_v21 = vld [vmem:[#allocation23_spill] sm:$0xff] }
  0x3a   : > { %v891_v63 = vand.u32 4294901760, %v890_v42  ;;  %732 = vmatprep.mubr.f32.mxu0 %v731_v18  ;;  %v574_v46 = vand.u32 2147483647, %v562_v39  ;;  %v565_v57 = vsub.f32 %v541_v29, %v553_v34  ;;  %v1010_v56 = vand.u32 4294901760, %v1009_v41 }
  0x3b   : > { %738 = vmatmul.mubr.f32.vlgmr.msra.gmra.mxu0 %v737_v27  ;;  %v4159_v33 = vand.u32 4294901760, %v575_v60  ;;  %v569_v42 = vsub.f32 %v545_v20, %v557_v44  ;;  %v898_v51 = vand.u32 4294901760, %v897_v50  ;;  %v578_v2 = vand.u32 2147483647, %v566_v53 }
  0x3c   : > { %2915 = vmatpush3.msra.mxu1 %v891_v63  ;;  %2931 = vmatpush3.msra.mxu0 %v3655_v23  ;;  %v4162_v18 = vand.u32 4294901760, %v574_v46  ;;  %v577_v7 = vand.u32 2147483647, %v565_v57  ;;  %v568_v34 = vsub.f32 %v544_v62, %v556_v61 }
  0x3d   : > { %2932 = vmatprep.subr.mxu0 %v3661_v25  ;;  %2916 = vmatprep.subr.mxu1 %v1010_v56  ;;  %v4166_v29 = vsub.f32 %v575_v60, %v4159_v33  ;;  %v4172_v63 = vand.u32 4294901760, %v578_v2  ;;  %v581_v13 = vand.u32 2147483647, %v569_v42 }
  0x3e   : > { %5212 = vst [vmem:[#allocation37_spill] sm:$0xff] %v4162_v18  ;;  %2933 = vmatpush3.msra.mxu0 %v3684_v31  ;;  %2917 = vmatpush3.msra.mxu1 %v898_v51  ;;  %v4170_v39 = vsub.f32 %v574_v46, %v4162_v18  ;;  %v4177_v12 = vand.u32 4294901760, %v577_v7  ;;  %v580_v44 = vand.u32 2147483647, %v568_v34  ;;  %v5216_v34 = vld [vmem:[#allocation19_spill] sm:$0xff] }
  0x3f   : > { %5213 = vst [vmem:[#allocation38_spill] sm:$0xff] %v4172_v63  ;;  %2934 = vmatprep.subr.mxu0 %v3693_v35  ;;  %1015 = vmatmul.mubr.f32.vlgmr.msra.gmra.mxu1 %v4087_v36  ;;  %v5132_v27 = vand.u32 4294901760, %v4166_v29  ;;  %v4185_v20 = vsub.f32 %v578_v2, %v4172_v63  ;;  %v4197_v50 = vand.u32 4294901760, %v581_v13 }
  0x40   : > { %5214 = vst [vmem:[#allocation39_spill] sm:$0xff] %v4177_v12  ;;  %2935 = vmatpush3.msra.mxu0 %v3709_v40  ;;  %2974 = vmatprep.subr.mxu1 %v3592_v3  ;;  %v5131_v62 = vand.u32 4294901760, %v4170_v39  ;;  %v4195_v60 = vsub.f32 %v577_v7, %v4177_v12  ;;  %v4207_v57 = vand.u32 4294901760, %v580_v44 }
  0x41   : > { %2936 = vmatprep.subr.mxu0 %v3723_v45  ;;  %2975 = vmatpush3.msra.mxu1 %v3594_v4  ;;  %v745_v41 = vsub.f32 %v4166_v29, %v5132_v27  ;;  %5215 = vst [vmem:[#allocation40_spill] sm:$0xff] %v4197_v50  ;;  %v5130_v53 = vand.u32 4294901760, %v4185_v20  ;;  %v4215_v56 = vsub.f32 %v581_v13, %v4197_v50  ;;  %v4241_v27 = vld [vmem:[%s3981_s16 + $0x10] sm:$0xff] }
  0x42   : > { %2937 = vmatpush3.msra.mxu0 %v3759_v59  ;;  %2976 = vmatprep.subr.mxu1 %v3596_v5  ;;  %v751_v46 = vsub.f32 %v4170_v39, %v5131_v62  ;;  %v5133_v61 = vand.u32 4294901760, %v4195_v60  ;;  %v4225_v2 = vsub.f32 %v580_v44, %v4207_v57  ;;  %v5218_v44 = vld [vmem:[#allocation5_spill] sm:$0xff]  ;;  %5221 = vst [vmem:[#allocation19_spill] sm:$0xff] %v4241_v27  ;;  %v4252_v62 = vld [vmem:[%s3981_s16 + $0x28] sm:$0xff] }
  0x43   : > { %2938 = vmatprep.subr.mxu0 %v3775_v0  ;;  %2977 = vmatpush3.msra.mxu1 %v3607_v9  ;;  %v746_v7 = vand.u32 4294901760, %v745_v41  ;;  %v760_v51 = vsub.f32 %v4185_v20, %v5130_v53  ;;  %v5223_v41 = vld [vmem:[#allocation7_spill] sm:$0xff]  ;;  %5226 = vst [vmem:[#allocation23_spill] sm:$0xff] %v4252_v62  ;;  %v5238_v62 = vld [vmem:[#allocation13_spill] sm:$0xff]  ;;  %v5249_v27 = vld [vmem:[#allocation20_spill] sm:$0xff] }
  0x44   : > { %2939 = vmatpush3.msra.mxu0 %v3789_v8  ;;  %2978 = vmatprep.subr.mxu1 %v3609_v10  ;;  %v752_v42 = vand.u32 4294901760, %v751_v46  ;;  %v766_v13 = vsub.f32 %v4195_v60, %v5133_v61  ;;  %v5217_v46 = vld [vmem:[#allocation21_spill] sm:$0xff]  ;;  %v5222_v61 = vld [vmem:[#allocation27_spill] sm:$0xff] }
  0x45   : > { %2940 = vmatprep.subr.mxu0 %v3809_v38  ;;  %2979 = vmatpush3.msra.mxu1 %v3611_v11  ;;  %v761_v53 = vand.u32 4294901760, %v760_v51  ;;  %v4249_v51 = vld [vmem:[%s3988_s19 + $0x10] sm:$0xff] }
  0x46   : > { %2941 = vmatpush3.msra.mxu0 %v3821_v48  ;;  %2980 = vmatprep.subr.mxu1 %v3625_v15  ;;  %v767_v36 = vand.u32 4294901760, %v766_v13  ;;  %5225 = vst [vmem:[#allocation21_spill] sm:$0xff] %v4249_v51  ;;  %v5229_v13 = vand.u32 4294901760, %v4225_v2  ;;  %v5248_v51 = vand.u32 4294901760, %v3655_v23  ;;  %v5255_v23 = vand.u32 4294901760, %v3693_v35 }
  0x47   : > { %2942 = vmatprep.subr.mxu0 %v3838_v54  ;;  %2981 = vmatpush3.msra.mxu1 %v3627_v16  ;;  %v5262_v35 = vand.u32 4294901760, %v3759_v59  ;;  %v5267_v59 = vand.u32 4294901760, %v4166_v29 }
  0x48   : > { %2943 = vmatpush3.msra.mxu0 %v3850_v6  ;;  %2982 = vmatprep.subr.mxu1 %v3630_v17 }
  0x49   : > { %2944 = vmatprep.subr.mxu0 %v3883_v55  ;;  %2983 = vmatpush3.msra.mxu1 %v3652_v22 }
  0x4a   : > { %2945 = vmatpush3.msra.mxu0 %v3899_v28  ;;  %2984 = vmatprep.subr.mxu1 %v3658_v24  ;;  %v4270_v24 = vld [vmem:[%s3981_s16 + $0x40] sm:$0xff] }
  0x4b   : > { %2946 = vmatprep.subr.mxu0 %v5216_v34  ;;  %747 = vmatprep.mubr.f32.mxu0 %v746_v7  ;;  %v5220_v7 = vld [vmem:[#allocation6_spill] sm:$0xff]  ;;  %5231 = vst [vmem:[#allocation42_spill] sm:$0xff] %v4270_v24 }
  0x4c   : > { %2947 = vmatpush3.msra.mxu0 %v5217_v46  ;;  %2985 = vmatpush3.msra.mxu1 %v5218_v44  ;;  %v5224_v44 = vand.u32 4294901760, %v4215_v56 }
  0x4d   : > { %2948 = vmatprep.subr.mxu0 %v5219_v21  ;;  %753 = vmatmul.mubr.f32.gmra.mxu0 %v752_v42 }
  0x4e   : > { %2949 = vmatpush3.msra.mxu0 %v3966_v43  ;;  %2986 = vmatprep.subr.mxu1 %v5220_v7  ;;  %v775_v42 = vsub.f32 %v4215_v56, %v5224_v44  ;;  %v4255_v43 = vld [vmem:[%s3988_s19 + $0x28] sm:$0xff]  ;;  %v5230_v44 = vld [vmem:[#allocation9_spill] sm:$0xff] }
  0x4f   : > { %2950 = vmatprep.subr.mxu0 %v5222_v61  ;;  %2987 = vmatpush3.msra.mxu1 %v5223_v41  ;;  %5227 = vst [vmem:[#allocation41_spill] sm:$0xff] %v4255_v43  ;;  %v5228_v7 = vld [vmem:[#allocation8_spill] sm:$0xff]  ;;  %v781_v41 = vsub.f32 %v4225_v2, %v5229_v13  ;;  %v5233_v13 = vld [vmem:[#allocation10_spill] sm:$0xff]  ;;  %v5240_v61 = vld [vmem:[#allocation15_spill] sm:$0xff] }
  0x50   : > { %2951 = vmatpush3.msra.mxu0 %v4009_v58  ;;  %2988 = vmatprep.subr.mxu1 %v5228_v7  ;;  %v4273_v7 = vld [vmem:[%s3988_s19 + $0x40] sm:$0xff] }
  0x51   : > { %2952 = vmatprep.subr.mxu0 %v4033_v30  ;;  %762 = vmatprep.mubr.f32.mxu0 %v761_v53  ;;  %5232 = vst [vmem:[#allocation43_spill] sm:$0xff] %v4273_v7  ;;  %v776_v53 = vand.u32 4294901760, %v775_v42  ;;  %v782_v58 = vand.u32 4294901760, %v781_v41  ;;  %v5237_v42 = vld [vmem:[#allocation12_spill] sm:$0xff]  ;;  %v5239_v41 = vld [vmem:[#allocation14_spill] sm:$0xff]  ;;  %v5242_v43 = vld [vmem:[#allocation35_spill] sm:$0xff] }
  0x52   : > { %2953 = vmatpush3.msra.mxu0 %v4046_v32  ;;  %2989 = vmatpush3.msra.mxu1 %v5230_v44  ;;  %v4279_v32 = vld [vmem:[%s3981_s16 + $0x58] sm:$0xff]  ;;  %v5246_v7 = vld [vmem:[#allocation3_spill] sm:$0xff] }
  0x53   : > { %768 = vmatmul.mubr.f32.gmra.mxu0 %v767_v36  ;;  %1020 = vmatprep.mubr.f32.mxu1 %v4159_v33  ;;  %5234 = vst [vmem:[#allocation10_spill] sm:$0xff] %v4279_v32  ;;  %v4282_v44 = vld [vmem:[%s3988_s19 + $0x58] sm:$0xff]  ;;  %v5236_v36 = vld [vmem:[#allocation11_spill] sm:$0xff]  ;;  %v5247_v24 = vand.u32 4294901760, %v5246_v7  ;;  %v5256_v7 = vld [vmem:[#allocation28_spill] sm:$0xff] }
  0x54   : > { %2954 = vmatprep.subr.mxu0 %v4057_v26  ;;  %2990 = vmatprep.subr.mxu1 %v5233_v13  ;;  %5235 = vst [vmem:[#allocation44_spill] sm:$0xff] %v4282_v44  ;;  %v5244_v44 = vld [vmem:[#allocation36_spill] sm:$0xff]  ;;  %v5245_v32 = vld [vmem:[#allocation18_spill] sm:$0xff] }
  0x55   : > { %1022 = vmatmul.mubr.f32.gmra.mxu1 %v4162_v18  ;;  %2955 = vmatpush3.msra.mxu0 %v4065_v47  ;;  %v5253_v18 = vand.u32 4294901760, %v3684_v31  ;;  %v5260_v31 = vld [vmem:[#allocation31_spill] sm:$0xff] }
  0x56   : > { %2991 = vmatpush3.msra.mxu1 %v5236_v36  ;;  %2956 = vmatprep.subr.mxu0 %v4074_v14 }
  0x57   : > { %2992 = vmatprep.subr.mxu1 %v5237_v42  ;;  %777 = vmatprep.mubr.f32.mxu0 %v776_v53  ;;  %v5241_v53 = vld [vmem:[#allocation16_spill] sm:$0xff] }
  0x58   : > { %2957 = vmatpush3.msra.mxu0 %v4082_v52  ;;  %2993 = vmatpush3.msra.mxu1 %v5238_v62 }
  0x59   : > { %783 = vmatmul.mubr.f32.gmra.mxu0 %v782_v58  ;;  %1027 = vmatprep.mubr.f32.mxu1 %v4172_v63  ;;  %v5243_v58 = vld [vmem:[#allocation17_spill] sm:$0xff]  ;;  %v5251_v63 = vld [vmem:[#allocation22_spill] sm:$0xff] }
  0x5a   : > { %2958 = vmatprep.subr.mxu0 %v4099_v19  ;;  %2994 = vmatprep.subr.mxu1 %v5239_v41 }
  0x5b   : > { %1029 = vmatmul.mubr.f32.gmra.mxu1 %v4177_v12  ;;  %2959 = vmatpush3.msra.mxu0 %v4110_v49  ;;  %v5250_v12 = vand.u32 4294901760, %v3661_v25  ;;  %v5257_v25 = vand.u32 4294901760, %v3709_v40  ;;  %v5264_v40 = vand.u32 4294901760, %v3775_v0  ;;  %v5268_v0 = vand.u32 4294901760, %v3821_v48 }
  0x5c   : > { %2995 = vmatpush3.msra.mxu1 %v5240_v61  ;;  %2960 = vmatprep.subr.mxu0 %v4123_v37  ;;  %v5276_v48 = vand.u32 4294901760, %v5216_v34  ;;  %v630_v34 = vld [vmem:[%s5045_s6 + $0x178] sm:$0xff] }
  0x5d   : > { %2996 = vmatprep.subr.mxu1 %v5241_v53  ;;  %2961 = vmatpush3.msra.mxu0 %v4135_v1 }
  0x5e   : > { %1171 = vmatprep.mubr.f32.mxu0 %v5242_v43  ;;  %2997 = vmatpush3.msra.mxu1 %v5243_v58 }
  0x5f   : > { %1034 = vmatprep.mubr.f32.mxu1 %v4197_v50  ;;  %1174 = vmatmul.mubr.f32.vlgmr.msra.gmra.mxu0 %v5244_v44  ;;  %v5252_v50 = vld [vmem:[#allocation24_spill] sm:$0xff] }
  0x60   : > { %2998 = vmatprep.subr.mxu1 %v5245_v32  ;;  %3018 = vmatprep.subr.mxu0 %v5247_v24  ;;  %v5254_v24 = vld [vmem:[#allocation26_spill] sm:$0xff] }
  0x61   : > { %1036 = vmatmul.mubr.f32.gmra.mxu1 %v4207_v57  ;;  %3019 = vmatpush3.msra.mxu0 %v5248_v51  ;;  %v5259_v51 = vand.u32 4294901760, %v3723_v45  ;;  %v5265_v45 = vand.u32 4294901760, %v3789_v8  ;;  %v5272_v8 = vand.u32 4294901760, %v3883_v55  ;;  %v5279_v55 = vld [vmem:[#allocation4_spill] sm:$0xff] }
  0x62   : > { %2999 = vmatpush3.msra.mxu1 %v5249_v27  ;;  %3020 = vmatprep.subr.mxu0 %v5250_v12  ;;  %v5258_v12 = vld [vmem:[#allocation30_spill] sm:$0xff] }
  0x63   : > { %3000 = vmatprep.subr.mxu1 %v5251_v63  ;;  %1180 = vmatprep.mubr.f32.mxu0 %v4166_v29  ;;  %v5285_v29 = vld [vmem:[#allocation27_spill] sm:$0xff] }
  0x64   : > { %3001 = vmatpush3.msra.mxu1 %v5252_v50  ;;  %3021 = vmatpush3.msra.mxu0 %v5253_v18  ;;  %v5261_v18 = vand.u32 4294901760, %v5242_v43  ;;  %v5266_v43 = vand.u32 4294901760, %v3809_v38  ;;  %v5274_v38 = vand.u32 4294901760, %v3899_v28  ;;  %v5283_v28 = vld [vmem:[#allocation5_spill] sm:$0xff] }
  0x65   : > { %1183 = vmatmul.mubr.f32.gmra.mxu0 %v4170_v39  ;;  %3002 = vmatprep.subr.mxu1 %v5254_v24 }
  0x66   : > { %3022 = vmatprep.subr.mxu0 %v5255_v23  ;;  %3003 = vmatpush3.msra.mxu1 %v5256_v7  ;;  %v5263_v23 = vand.u32 4294901760, %v5244_v44 }
  0x67   : > { %3023 = vmatpush3.msra.mxu0 %v5257_v25  ;;  %3004 = vmatprep.subr.mxu1 %v5258_v12  ;;  %v5295_v25 = vld [vmem:[#allocation9_spill] sm:$0xff] }
  0x68   : > { %3024 = vmatprep.subr.mxu0 %v5259_v51  ;;  %1189 = vmatprep.mubr.f32.mxu0 %v4185_v20  ;;  %v5296_v51 = vand.u32 4294901760, %v4057_v26  ;;  %v5299_v26 = vand.u32 4294901760, %v4082_v52  ;;  %v5302_v52 = vand.u32 4294901760, %v4123_v37  ;;  %v5305_v37 = vld [vmem:[#allocation34_spill] sm:$0xff] }
  0x69   : > { %3005 = vmatpush3.msra.mxu1 %v5260_v31  ;;  %1305 = vmatprep.mubr.f32.mxu1 %v5261_v18  ;;  %v629_v18 = vld [vmem:[%s5045_s6 + $0x170] sm:$0xff] }
  0x6a   : > { %3025 = vmatpush3.msra.mxu0 %v5262_v35  ;;  %1309 = vmatmul.mubr.f32.vlgmr.msra.gmra.mxu1 %v5263_v23  ;;  %v4414_v35 = vand.u32 4294901760, %v630_v34  ;;  %v5298_v23 = vand.u32 4294901760, %v4074_v14  ;;  %v5301_v14 = vand.u32 4294901760, %v4110_v49 }
  0x6b   : > { %1192 = vmatmul.mubr.f32.gmra.mxu0 %v4195_v60  ;;  %3026 = vmatprep.subr.mxu0 %v5264_v40  ;;  %v4422_v40 = vand.u32 4294901760, %v629_v18 }
  0x6c   : > { %3062 = vmatprep.subr.mxu1 %v3592_v3  ;;  %3027 = vmatpush3.msra.mxu0 %v5265_v45  ;;  %v5269_v3 = vand.u32 4294901760, %v4170_v39  ;;  %v5286_v39 = vand.u32 4294901760, %v5285_v29  ;;  %v620_v29 = vld [vmem:[%s5045_s6 + $0x128] sm:$0xff] }
  0x6d   : > { %3063 = vmatpush3.msra.mxu1 %v3594_v4  ;;  %3028 = vmatprep.subr.mxu0 %v5266_v43  ;;  %v5270_v4 = vand.u32 4294901760, %v3838_v54  ;;  %v5281_v54 = vld [vmem:[#allocation25_spill] sm:$0xff]  ;;  %v4448_v49 = vsub.f32 %v629_v18, %v4422_v40 }
  0x6e   : > { %3064 = vmatprep.subr.mxu1 %v3596_v5  ;;  %1198 = vmatprep.mubr.f32.mxu0 %v4215_v56  ;;  %v5271_v5 = vand.u32 4294901760, %v3850_v6  ;;  %v5282_v6 = vand.u32 4294901760, %v5281_v54 }
  0x6f   : > { %1316 = vmatprep.mubr.f32.mxu1 %v5267_v59  ;;  %3029 = vmatpush3.msra.mxu0 %v5268_v0  ;;  %v5306_v0 = vld [vmem:[#allocation37_spill] sm:$0xff] }
  0x70   : > { %3065 = vmatpush3.msra.mxu1 %v3607_v9  ;;  %1201 = vmatmul.mubr.f32.gmra.mxu0 %v4225_v2  ;;  %v5273_v9 = vand.u32 4294901760, %v4185_v20 }
  0x71   : > { %1320 = vmatmul.mubr.f32.gmra.mxu1 %v5269_v3  ;;  %3030 = vmatprep.subr.mxu0 %v5270_v4 }
  0x72   : > { %3066 = vmatprep.subr.mxu1 %v3609_v10  ;;  %3031 = vmatpush3.msra.mxu0 %v5271_v5  ;;  %v5275_v10 = vand.u32 4294901760, %v4195_v60  ;;  %v5290_v60 = vld [vmem:[#allocation7_spill] sm:$0xff] }
  0x73   : > { %3067 = vmatpush3.msra.mxu1 %v3611_v11  ;;  %3032 = vmatprep.subr.mxu0 %v5272_v8  ;;  %v5277_v11 = vand.u32 4294901760, %v5217_v46  ;;  %v5292_v46 = vld [vmem:[#allocation8_spill] sm:$0xff] }
  0x74   : > { %3068 = vmatprep.subr.mxu1 %v3625_v15  ;;  %1327 = vmatprep.mubr.f32.mxu1 %v5273_v9  ;;  %v5278_v15 = vand.u32 4294901760, %v5219_v21  ;;  %v5288_v21 = vld [vmem:[#allocation29_spill] sm:$0xff] }
  0x75   : > { %3033 = vmatpush3.msra.mxu0 %v5274_v38  ;;  %3069 = vmatpush3.msra.mxu1 %v3627_v16  ;;  %v5280_v16 = vand.u32 4294901760, %v4215_v56  ;;  %v5289_v20 = vand.u32 4294901760, %v5288_v21  ;;  %v5291_v56 = vand.u32 4294901760, %v4033_v30  ;;  %v5297_v30 = vand.u32 4294901760, %v4065_v47  ;;  %v628_v47 = vld [vmem:[%s5045_s6 + $0x168] sm:$0xff] }
  0x76   : > { %1331 = vmatmul.mubr.f32.gmra.mxu1 %v5275_v10  ;;  %3034 = vmatprep.subr.mxu0 %v5276_v48 }
  0x77   : > { %3070 = vmatprep.subr.mxu1 %v3630_v17  ;;  %3035 = vmatpush3.msra.mxu0 %v5277_v11  ;;  %v5284_v17 = vand.u32 4294901760, %v4225_v2  ;;  %v5293_v2 = vld [vmem:[#allocation32_spill] sm:$0xff] }
  0x78   : > { %3071 = vmatpush3.msra.mxu1 %v3652_v22  ;;  %3036 = vmatprep.subr.mxu0 %v5278_v15  ;;  %v5287_v22 = vld [vmem:[#allocation6_spill] sm:$0xff]  ;;  %v5294_v44 = vand.u32 4294901760, %v5293_v2  ;;  %v5311_v2 = vld [vmem:[#allocation21_spill] sm:$0xff] }
  0x79   : > { %3072 = vmatprep.subr.mxu1 %v5279_v55  ;;  %1338 = vmatprep.mubr.f32.mxu1 %v5280_v16  ;;  %v621_v16 = vld [vmem:[%s5045_s6 + $0x130] sm:$0xff] }
  0x7a   : > { %3037 = vmatpush3.msra.mxu0 %v5282_v6  ;;  %3073 = vmatpush3.msra.mxu1 %v5283_v28  ;;  %v4553_v21 = vand.u32 4294901760, %v621_v16 }
  0x7b   : > { %1342 = vmatmul.mubr.f32.gmra.mxu1 %v5284_v17  ;;  %3038 = vmatprep.subr.mxu0 %v5286_v39  ;;  %v5309_v39 = vld [vmem:[#allocation40_spill] sm:$0xff] }
  0x7c   : > { %3074 = vmatprep.subr.mxu1 %v5287_v22  ;;  %3039 = vmatpush3.msra.mxu0 %v5289_v20 }
  0x7d   : > { %3075 = vmatpush3.msra.mxu1 %v5290_v60  ;;  %3040 = vmatprep.subr.mxu0 %v5291_v56 }
  0x7e   : > { %3076 = vmatprep.subr.mxu1 %v5292_v46  ;;  %3041 = vmatpush3.msra.mxu0 %v5294_v44  ;;  %v5310_v46 = vld [vmem:[#allocation19_spill] sm:$0xff] }
  0x7f   : > { %3077 = vmatpush3.msra.mxu1 %v5295_v25  ;;  %3042 = vmatprep.subr.mxu0 %v5296_v51  ;;  %v5312_v44 = vsub.f32 %v5310_v46, %v5311_v2  ;;  %v4572_v51 = vand.u32 4294901760, %v620_v29  ;;  %v616_v2 = vld [vmem:[%s5045_s6 + $0x108] sm:$0xff] }
  0x80   : > { %3078 = vmatprep.subr.mxu1 %v5233_v13  ;;  %3043 = vmatpush3.msra.mxu0 %v5297_v30  ;;  %v5300_v13 = vand.u32 4294901760, %v4099_v19  ;;  %v627_v19 = vld [vmem:[%s5045_s6 + $0x160] sm:$0xff] }
  0x81   : > { %3079 = vmatpush3.msra.mxu1 %v5236_v36  ;;  %3044 = vmatprep.subr.mxu0 %v5298_v23  ;;  %v4434_v36 = vsub.f32 %v630_v34, %v4414_v35  ;;  %v619_v34 = vld [vmem:[%s5045_s6 + $0x120] sm:$0xff]  ;;  %v573_v25 = vand.u32 2147483647, %v5312_v44  ;;  %v5314_v23 = vld [vmem:[#allocation41_spill] sm:$0xff] }
  0x82   : > { %3080 = vmatprep.subr.mxu1 %v5237_v42  ;;  %3045 = vmatpush3.msra.mxu0 %v5299_v26  ;;  %v4445_v42 = vand.u32 4294901760, %v628_v47  ;;  %v5313_v30 = vld [vmem:[#allocation23_spill] sm:$0xff] }
  0x83   : > { %3081 = vmatpush3.msra.mxu1 %v5238_v62  ;;  %3046 = vmatprep.subr.mxu0 %v5300_v13  ;;  %v5303_v62 = vand.u32 4294901760, %v4135_v1  ;;  %v626_v1 = vld [vmem:[%s5045_s6 + $0x158] sm:$0xff]  ;;  %v5315_v26 = vsub.f32 %v5313_v30, %v5314_v23 }
  0x84   : > { %3082 = vmatprep.subr.mxu1 %v5239_v41  ;;  %3047 = vmatpush3.msra.mxu0 %v5301_v14  ;;  %v5304_v41 = vld [vmem:[#allocation33_spill] sm:$0xff]  ;;  %v4473_v45 = vsub.f32 %v628_v47, %v4445_v42  ;;  %v4477_v43 = vand.u32 4294901760, %v626_v1  ;;  %v618_v14 = vld [vmem:[%s5045_s6 + $0x118] sm:$0xff] }
  0x85   : > { %3083 = vmatpush3.msra.mxu1 %v5240_v61  ;;  %3048 = vmatprep.subr.mxu0 %v5302_v52  ;;  %v4454_v61 = vand.u32 4294901760, %v627_v19  ;;  %v576_v13 = vand.u32 2147483647, %v5315_v26  ;;  %v4588_v52 = vand.u32 4294901760, %v619_v34 }
  0x86   : > { %3084 = vmatprep.subr.mxu1 %v5241_v53  ;;  %3049 = vmatpush3.msra.mxu0 %v5303_v62  ;;  %v4460_v53 = vand.u32 4294901760, %v4434_v36  ;;  %v4498_v4 = vand.u32 4294901760, %v4473_v45  ;;  %v4508_v8 = vsub.f32 %v626_v1, %v4477_v43  ;;  %v4594_v62 = vsub.f32 %v621_v16, %v4553_v21  ;;  %v617_v1 = vld [vmem:[%s5045_s6 + $0x110] sm:$0xff]  ;;  %v5320_v16 = vld [vmem:[#allocation10_spill] sm:$0xff] }
  0x87   : > { %1508 = vmatprep.mubr.f32.mxu0 %v5304_v41  ;;  %3085 = vmatpush3.msra.mxu1 %v5243_v58  ;;  %v4470_v58 = vand.u32 4294901760, %v4448_v49  ;;  %v4487_v59 = vsub.f32 %v627_v19, %v4454_v61  ;;  %v4626_v46 = vand.u32 4294901760, %v617_v1  ;;  %v4635_v44 = vsub.f32 %v619_v34, %v4588_v52  ;;  %v615_v34 = vld [vmem:[%s5045_s6 + $0x100] sm:$0xff] }
  0x88   : > { %1510 = vmatmul.mubr.f32.vlgmr.msra.gmra.mxu0 %v5305_v37  ;;  %3086 = vmatprep.subr.mxu1 %v5245_v32  ;;  %v625_v32 = vld [vmem:[%s5045_s6 + $0x150] sm:$0xff]  ;;  %v1800_v11 = vsub.f32 %v4473_v45, %v4498_v4  ;;  %v4532_v55 = vand.u32 4294901760, %v4508_v8 }
  0x89   : > { %3226 = vmatprep.subr.mxu0 %v4414_v35  ;;  %3087 = vmatpush3.msra.mxu1 %v5249_v27  ;;  %v624_v27 = vld [vmem:[%s5045_s6 + $0x148] sm:$0xff]  ;;  %v4491_v3 = vand.u32 4294901760, %v625_v32  ;;  %v4513_v38 = vand.u32 4294901760, %v4487_v59 }
  0x8a   : > { %3227 = vmatpush3.msra.mxu0 %v4414_v35  ;;  %3088 = vmatprep.subr.mxu1 %v5251_v63  ;;  %v1786_v63 = vsub.f32 %v4434_v36, %v4460_v53  ;;  %v4502_v5 = vand.u32 4294901760, %v624_v27  ;;  %v1801_v22 = vand.u32 4294901760, %v1800_v11  ;;  %v1814_v60 = vsub.f32 %v4508_v8, %v4532_v55 }
  0x8b   : > { %3228 = vmatprep.subr.mxu0 %v4422_v40  ;;  %1515 = vmatprep.mubr.f32.mxu0 %v4159_v33  ;;  %v4521_v10 = vsub.f32 %v625_v32, %v4491_v3  ;;  %v1807_v6 = vsub.f32 %v4487_v59, %v4513_v38  ;;  %v4602_v32 = vand.u32 4294901760, %v573_v25 }
  0x8c   : > { %3089 = vmatpush3.msra.mxu1 %v5252_v50  ;;  %3229 = vmatpush3.msra.mxu0 %v4422_v40  ;;  %v1793_v50 = vsub.f32 %v4448_v49, %v4470_v58  ;;  %v1787_v9 = vand.u32 4294901760, %v1786_v63  ;;  %v4538_v54 = vsub.f32 %v624_v27, %v4502_v5  ;;  %v5316_v63 = vld [vmem:[#allocation42_spill] sm:$0xff]  ;;  %v5317_v27 = vld [vmem:[#allocation43_spill] sm:$0xff] }
  0x8d   : > { %1517 = vmatmul.mubr.f32.gmra.mxu0 %v5306_v0  ;;  %3090 = vmatprep.subr.mxu1 %v5254_v24  ;;  %v623_v24 = vld [vmem:[%s5045_s6 + $0x140] sm:$0xff]  ;;  %v4547_v17 = vand.u32 4294901760, %v4521_v10 }
  0x8e   : > { %3230 = vmatprep.subr.mxu0 %v4445_v42  ;;  %3091 = vmatpush3.msra.mxu1 %v5256_v7  ;;  %v5307_v7 = vld [vmem:[#allocation38_spill] sm:$0xff]  ;;  %v1794_v48 = vand.u32 4294901760, %v1793_v50  ;;  %v4527_v15 = vand.u32 4294901760, %v623_v24  ;;  %v4563_v56 = vand.u32 4294901760, %v4538_v54 }
  0x8f   : > { %3231 = vmatpush3.msra.mxu0 %v4445_v42  ;;  %3092 = vmatprep.subr.mxu1 %v5258_v12  ;;  %v622_v12 = vld [vmem:[%s5045_s6 + $0x138] sm:$0xff]  ;;  %v1821_v47 = vsub.f32 %v4521_v10, %v4547_v17 }
  0x90   : > { %3232 = vmatprep.subr.mxu0 %v4454_v61  ;;  %1522 = vmatprep.mubr.f32.mxu0 %v5307_v7  ;;  %v4543_v28 = vand.u32 4294901760, %v622_v12  ;;  %v4556_v20 = vsub.f32 %v623_v24, %v4527_v15  ;;  %v4608_v24 = vand.u32 4294901760, %v618_v14 }
  0x91   : > { %3093 = vmatpush3.msra.mxu1 %v5260_v31  ;;  %1633 = vmatprep.mubr.f32.mxu1 %v5304_v41  ;;  %v5308_v31 = vld [vmem:[#allocation39_spill] sm:$0xff]  ;;  %v1815_v41 = vand.u32 4294901760, %v1814_v60  ;;  %v1822_v11 = vand.u32 4294901760, %v1821_v47 }
  0x92   : > { %3233 = vmatpush3.msra.mxu0 %v4454_v61  ;;  %1635 = vmatmul.mubr.f32.vlgmr.msra.gmra.mxu1 %v5305_v37  ;;  %v4575_v18 = vsub.f32 %v622_v12, %v4543_v28  ;;  %v4591_v19 = vand.u32 4294901760, %v4556_v20  ;;  %v1828_v37 = vsub.f32 %v4538_v54, %v4563_v56  ;;  %v4614_v12 = vsub.f32 %v620_v29, %v4572_v51 }
  0x93   : > { %1524 = vmatmul.mubr.f32.gmra.mxu0 %v5308_v31  ;;  %3234 = vmatprep.subr.mxu0 %v4477_v43  ;;  %v4629_v29 = vand.u32 4294901760, %v4594_v62 }
  0x94   : > { %3264 = vmatprep.subr.mxu1 %v1787_v9  ;;  %3235 = vmatpush3.msra.mxu0 %v4477_v43  ;;  %v4647_v26 = vand.u32 4294901760, %v4614_v12 }
  0x95   : > { %3265 = vmatpush3.msra.mxu1 %v1787_v9  ;;  %3236 = vmatprep.subr.mxu0 %v4491_v3  ;;  %v4611_v9 = vand.u32 4294901760, %v4575_v18  ;;  %5323 = vst [vmem:[#allocation12_spill] sm:$0xff] %v4629_v29 }
  0x96   : > { %3266 = vmatprep.subr.mxu1 %v1794_v48  ;;  %1529 = vmatprep.mubr.f32.mxu0 %v5309_v39  ;;  %5324 = vst [vmem:[#allocation13_spill] sm:$0xff] %v4647_v26 }
  0x97   : > { %1640 = vmatprep.mubr.f32.mxu1 %v4159_v33  ;;  %3237 = vmatpush3.msra.mxu0 %v4491_v3  ;;  %v1808_v33 = vand.u32 4294901760, %v1807_v6  ;;  %5319 = vst [vmem:[#allocation11_spill] sm:$0xff] %v4611_v9  ;;  %v5321_v6 = vld [vmem:[#allocation44_spill] sm:$0xff]  ;;  %v1842_v23 = vsub.f32 %v4575_v18, %v4611_v9 }
  0x98   : > { %3267 = vmatpush3.msra.mxu1 %v1794_v48  ;;  %1531 = vmatmul.mubr.f32.gmra.mxu0 %v4207_v57  ;;  %v4616_v48 = vand.u32 4294901760, %v576_v13 }
  0x99   : > { %1642 = vmatmul.mubr.f32.gmra.mxu1 %v5306_v0  ;;  %3238 = vmatprep.subr.mxu0 %v4502_v5  ;;  %v5318_v0 = vsub.f32 %v5316_v63, %v5317_v27  ;;  %v1849_v27 = vsub.f32 %v4594_v62, %v4629_v29 }
  0x9a   : > { %3268 = vmatprep.subr.mxu1 %v1801_v22  ;;  %3239 = vmatpush3.msra.mxu0 %v4502_v5  ;;  %v4653_v47 = vsub.f32 %v576_v13, %v4616_v48  ;;  %v4667_v13 = vand.u32 4294901760, %v4635_v44 }
  0x9b   : > { %3269 = vmatpush3.msra.mxu1 %v1801_v22  ;;  %3240 = vmatprep.subr.mxu0 %v4527_v15  ;;  %v579_v50 = vand.u32 2147483647, %v5318_v0  ;;  %v5322_v22 = vsub.f32 %v5320_v16, %v5321_v6  ;;  %v1843_v16 = vand.u32 4294901760, %v1842_v23  ;;  %v1856_v6 = vsub.f32 %v4614_v12, %v4647_v26 }
  0x9c   : > { %3270 = vmatprep.subr.mxu1 %v1808_v33  ;;  %1647 = vmatprep.mubr.f32.mxu1 %v5307_v7  ;;  %v1835_v7 = vsub.f32 %v4556_v20, %v4591_v19  ;;  %5325 = vst [vmem:[#allocation14_spill] sm:$0xff] %v4667_v13  ;;  %v1863_v23 = vsub.f32 %v4635_v44, %v4667_v13  ;;  %v5328_v13 = vand.u32 4294901760, %v4653_v47 }
  0x9d   : > { %3241 = vmatpush3.msra.mxu0 %v4527_v15  ;;  %3271 = vmatpush3.msra.mxu1 %v1808_v33  ;;  %v582_v60 = vand.u32 2147483647, %v5322_v22  ;;  %v4639_v33 = vsub.f32 %v573_v25, %v4602_v32  ;;  %v4641_v30 = vand.u32 4294901760, %v579_v50  ;;  %v4656_v25 = vsub.f32 %v618_v14, %v4608_v24 }
  0x9e   : > { %1649 = vmatmul.mubr.f32.gmra.mxu1 %v5308_v31  ;;  %3242 = vmatprep.subr.mxu0 %v4543_v28  ;;  %v1829_v31 = vand.u32 4294901760, %v1828_v37  ;;  %v1836_v63 = vand.u32 4294901760, %v1835_v7  ;;  %v4670_v14 = vsub.f32 %v617_v1, %v4626_v46  ;;  %v1850_v7 = vand.u32 4294901760, %v1849_v27 }
  0x9f   : > { %3272 = vmatprep.subr.mxu1 %v1815_v41  ;;  %3243 = vmatpush3.msra.mxu0 %v4543_v28  ;;  %v4661_v37 = vand.u32 4294901760, %v582_v60  ;;  %v5160_v0 = vand.u32 4294901760, %v4639_v33  ;;  %v1857_v27 = vand.u32 4294901760, %v1856_v6  ;;  %v1755_v26 = vsub.f32 %v4653_v47, %v5328_v13 }
  0xa0   : > { %3273 = vmatpush3.msra.mxu1 %v1815_v41  ;;  %3244 = vmatprep.subr.mxu0 %v4553_v21  ;;  %v4659_v41 = vand.u32 4294901760, %v616_v2  ;;  %v4698_v1 = vand.u32 4294901760, %v4670_v14 }
  0xa1   : > { %3274 = vmatprep.subr.mxu1 %v1822_v11  ;;  %1654 = vmatprep.mubr.f32.mxu1 %v5309_v39  ;;  %v4674_v39 = vand.u32 4294901760, %v615_v34  ;;  %v4689_v22 = vsub.f32 %v582_v60, %v4661_v37  ;;  %v1745_v60 = vsub.f32 %v4639_v33, %v5160_v0  ;;  %v1756_v29 = vand.u32 4294901760, %v1755_v26 }
  0xa2   : > { %3245 = vmatpush3.msra.mxu0 %v4553_v21  ;;  %3275 = vmatpush3.msra.mxu1 %v1822_v11  ;;  %v4678_v11 = vsub.f32 %v579_v50, %v4641_v30  ;;  %v4692_v50 = vsub.f32 %v616_v2, %v4659_v41  ;;  %5327 = vst [vmem:[#allocation16_spill] sm:$0xff] %v4698_v1 }
  0xa3   : > { %1656 = vmatmul.mubr.f32.gmra.mxu1 %v4207_v57  ;;  %3246 = vmatprep.subr.mxu0 %v4572_v51  ;;  %v4685_v57 = vand.u32 4294901760, %v4656_v25  ;;  %v1877_v6 = vsub.f32 %v4670_v14, %v4698_v1  ;;  %v1746_v13 = vand.u32 4294901760, %v1745_v60 }
  0xa4   : > { %3276 = vmatprep.subr.mxu1 %v1829_v31  ;;  %3247 = vmatpush3.msra.mxu0 %v4572_v51  ;;  %v4717_v2 = vand.u32 4294901760, %v4692_v50 }
  0xa5   : > { %5326 = vst [vmem:[#allocation15_spill] sm:$0xff] %v4685_v57  ;;  %3277 = vmatpush3.msra.mxu1 %v1829_v31  ;;  %3248 = vmatprep.subr.mxu0 %v4588_v52  ;;  %v4706_v31 = vsub.f32 %v615_v34, %v4674_v39  ;;  %v1864_v34 = vand.u32 4294901760, %v1863_v23 }
  0xa6   : > { %3278 = vmatprep.subr.mxu1 %v1836_v63  ;;  %3249 = vmatpush3.msra.mxu0 %v4588_v52  ;;  %v1884_v60 = vsub.f32 %v4692_v50, %v4717_v2 }
  0xa7   : > { %3279 = vmatpush3.msra.mxu1 %v1836_v63  ;;  %3250 = vmatprep.subr.mxu0 %v4608_v24  ;;  %v1870_v63 = vsub.f32 %v4656_v25, %v4685_v57  ;;  %v4727_v0 = vand.u32 4294901760, %v4706_v31 }
  0xa8   : > { %3280 = vmatprep.subr.mxu1 %v1843_v16  ;;  %3251 = vmatpush3.msra.mxu0 %v4608_v24 }
  0xa9   : > { %3281 = vmatpush3.msra.mxu1 %v1843_v16  ;;  %3252 = vmatprep.subr.mxu0 %v4626_v46  ;;  %v5329_v16 = vand.u32 4294901760, %v4678_v11  ;;  %v1871_v9 = vand.u32 4294901760, %v1870_v63  ;;  %v1891_v26 = vsub.f32 %v4706_v31, %v4727_v0  ;;  %v1885_v63 = vand.u32 4294901760, %v1884_v60 }
  0xaa   : > { %3282 = vmatprep.subr.mxu1 %v1850_v7  ;;  %3253 = vmatpush3.msra.mxu0 %v4626_v46 }
  0xab   : > { %3283 = vmatpush3.msra.mxu1 %v1850_v7  ;;  %3254 = vmatprep.subr.mxu0 %v4659_v41  ;;  %v1765_v57 = vsub.f32 %v4678_v11, %v5329_v16  ;;  %v5330_v7 = vand.u32 4294901760, %v4689_v22  ;;  %v1878_v16 = vand.u32 4294901760, %v1877_v6  ;;  %v1892_v6 = vand.u32 4294901760, %v1891_v26 }
  0xac   : > { %3284 = vmatprep.subr.mxu1 %v1857_v27  ;;  %3255 = vmatpush3.msra.mxu0 %v4659_v41 }
  0xad   : > { %3285 = vmatpush3.msra.mxu1 %v1857_v27  ;;  %3256 = vmatprep.subr.mxu0 %v4674_v39  ;;  %v1775_v23 = vsub.f32 %v4689_v22, %v5330_v7  ;;  %v1766_v1 = vand.u32 4294901760, %v1765_v57 }
  0xae   : > { %3286 = vmatprep.subr.mxu1 %v1864_v34  ;;  %3257 = vmatpush3.msra.mxu0 %v4674_v39 }
  0xaf   : > { %3258 = vmatprep.mubr.f32.mxu0 %v1746_v13  ;;  %3287 = vmatpush3.msra.mxu1 %v1864_v34  ;;  %v1776_v27 = vand.u32 4294901760, %v1775_v23 }
  0xb0   : > { %3259 = vmatmul.mubr.f32.vlgmr.msra.gmra.mxu0 %v1756_v29  ;;  %3288 = vmatprep.subr.mxu1 %v1871_v9  ;;  %v498_v29 = vld [vmem:[%s4907_s30 + $0x18] sm:$0xff] }
  0xb1   : > { %3302 = vmatprep.subr.mxu0 %v4434_v36  ;;  %3289 = vmatpush3.msra.mxu1 %v1871_v9 }
  0xb2   : > { %3303 = vmatpush3.msra.mxu0 %v4434_v36  ;;  %3290 = vmatprep.subr.mxu1 %v1878_v16  ;;  %v5331_v36 = vand.u32 4294901760, %v4639_v33 }
  0xb3   : > { %3304 = vmatprep.subr.mxu0 %v4448_v49  ;;  %3261 = vmatprep.mubr.f32.mxu0 %v1766_v1 }
  0xb4   : > { %3291 = vmatpush3.msra.mxu1 %v1878_v16  ;;  %3305 = vmatpush3.msra.mxu0 %v4448_v49  ;;  %v5332_v49 = vand.u32 4294901760, %v4653_v47 }
  0xb5   : > { %3262 = vmatmul.mubr.f32.gmra.mxu0 %v1776_v27  ;;  %3292 = vmatprep.subr.mxu1 %v1885_v63 }
  0xb6   : > { %3306 = vmatprep.subr.mxu0 %v4473_v45  ;;  %3293 = vmatpush3.msra.mxu1 %v1885_v63 }
  0xb7   : > { %3307 = vmatpush3.msra.mxu0 %v4473_v45  ;;  %3294 = vmatprep.subr.mxu1 %v1892_v6  ;;  %v5339_v45 = vld [vmem:[#allocation15_spill] sm:$0xff] }
  0xb8   : > { %3308 = vmatprep.subr.mxu0 %v4487_v59  ;;  %3295 = vmatpush3.msra.mxu1 %v1892_v6 }
  0xb9   : > { %3296 = vmatprep.mubr.f32.mxu1 %v4602_v32  ;;  %3309 = vmatpush3.msra.mxu0 %v4487_v59  ;;  %v464_v59 = vld [vmem:[%s407_s21] sm:$0xff] }
  0xba   : > { %3297 = vmatmul.mubr.f32.vlgmr.msra.gmra.mxu1 %v4616_v48  ;;  %3310 = vmatprep.subr.mxu0 %v4508_v8 }
  0xbb   : > { %3340 = vmatprep.subr.mxu1 %v4414_v35  ;;  %3311 = vmatpush3.msra.mxu0 %v4508_v8  ;;  %v4916_v8 = vld [vmem:[%s413_s10] sm:$0xff] }
  0xbc   : > { %3341 = vmatpush3.msra.mxu1 %v4414_v35  ;;  %3312 = vmatprep.subr.mxu0 %v4521_v10  ;;  %v472_v23 = vunpack.c.2.s8 %v4916_v8 }
  0xbd   : > { %3342 = vmatprep.subr.mxu1 %v4422_v40  ;;  %3299 = vmatprep.mubr.f32.mxu1 %v4641_v30 }
  0xbe   : > { %3313 = vmatpush3.msra.mxu0 %v4521_v10  ;;  %3343 = vmatpush3.msra.mxu1 %v4422_v40  ;;  %v471_v10 = vunpack.c.1.s8 %v4916_v8 }
  0xbf   : > { %3300 = vmatmul.mubr.f32.gmra.mxu1 %v4661_v37  ;;  %3314 = vmatprep.subr.mxu0 %v4538_v54 }
  0xc0   : > { %3344 = vmatprep.subr.mxu1 %v4445_v42  ;;  %3315 = vmatpush3.msra.mxu0 %v4538_v54  ;;  %v486_v54 = vld [vmem:[%s419_s12] sm:$0xff]  ;;  %vm475_vm10 = vcmp.ne.s32.totalorder %v471_v10, 0 }
  0xc1   : > { %3345 = vmatpush3.msra.mxu1 %v4445_v42  ;;  %3316 = vmatprep.subr.mxu0 %v4556_v20  ;;  %v489_v60 = vunpack.c.2.s8 %v486_v54 }
  0xc2   : > { %3346 = vmatprep.subr.mxu1 %v4454_v61  ;;  %3317 = vmatpush3.msra.mxu0 %v4556_v20 }
  0xc3   : > { %3347 = vmatpush3.msra.mxu1 %v4454_v61  ;;  %3318 = vmatprep.subr.mxu0 %v4575_v18 }
  0xc4   : > { %3348 = vmatprep.subr.mxu1 %v4477_v43  ;;  %3319 = vmatpush3.msra.mxu0 %v4575_v18 }
  0xc5   : > { %3349 = vmatpush3.msra.mxu1 %v4477_v43  ;;  %3320 = vmatprep.subr.mxu0 %v4594_v62 }
  0xc6   : > { %3350 = vmatprep.subr.mxu1 %v4491_v3  ;;  %3321 = vmatpush3.msra.mxu0 %v4594_v62 }
  0xc7   : > { %3351 = vmatpush3.msra.mxu1 %v4491_v3  ;;  %3322 = vmatprep.subr.mxu0 %v4614_v12 }
  0xc8   : > { %3352 = vmatprep.subr.mxu1 %v4502_v5  ;;  %3323 = vmatpush3.msra.mxu0 %v4614_v12 }
  0xc9   : > { %3353 = vmatpush3.msra.mxu1 %v4502_v5  ;;  %3324 = vmatprep.subr.mxu0 %v4635_v44 }
  0xca   : > { %3354 = vmatprep.subr.mxu1 %v4527_v15  ;;  %3325 = vmatpush3.msra.mxu0 %v4635_v44 }
  0xcb   : > { %3355 = vmatpush3.msra.mxu1 %v4527_v15  ;;  %3326 = vmatprep.subr.mxu0 %v4656_v25 }
  0xcc   : > { %3356 = vmatprep.subr.mxu1 %v4543_v28  ;;  %3327 = vmatpush3.msra.mxu0 %v4656_v25 }
  0xcd   : > { %3357 = vmatpush3.msra.mxu1 %v4543_v28  ;;  %3328 = vmatprep.subr.mxu0 %v4670_v14 }
  0xce   : > { %3358 = vmatprep.subr.mxu1 %v4553_v21  ;;  %3329 = vmatpush3.msra.mxu0 %v4670_v14 }
  0xcf   : > { %3359 = vmatpush3.msra.mxu1 %v4553_v21  ;;  %3330 = vmatprep.subr.mxu0 %v4692_v50 }
  0xd0   : > { %3360 = vmatprep.subr.mxu1 %v4572_v51  ;;  %3331 = vmatpush3.msra.mxu0 %v4692_v50 }
  0xd1   : > { %3361 = vmatpush3.msra.mxu1 %v4572_v51  ;;  %3332 = vmatprep.subr.mxu0 %v4706_v31 }
  0xd2   : > { %3362 = vmatprep.subr.mxu1 %v4588_v52  ;;  %3333 = vmatpush3.msra.mxu0 %v4706_v31 }
  0xd3   : > { %3334 = vmatprep.mubr.f32.mxu0 %v4639_v33  ;;  %3363 = vmatpush3.msra.mxu1 %v4588_v52 }
  0xd4   : > { %3335 = vmatmul.mubr.f32.vlgmr.msra.gmra.mxu0 %v4653_v47  ;;  %3364 = vmatprep.subr.mxu1 %v4608_v24  ;;  %v490_v47 = vunpack.c.3.s8 %v486_v54 }
  0xd5   : > { %3378 = vmatprep.subr.mxu0 %v4460_v53  ;;  %3365 = vmatpush3.msra.mxu1 %v4608_v24 }
  0xd6   : > { %3379 = vmatpush3.msra.mxu0 %v4460_v53  ;;  %3366 = vmatprep.subr.mxu1 %v4626_v46  ;;  %v5333_v53 = vand.u32 4294901760, %v4678_v11 }
  0xd7   : > { %3380 = vmatprep.subr.mxu0 %v4470_v58  ;;  %3337 = vmatprep.mubr.f32.mxu0 %v4678_v11 }
  0xd8   : > { %3367 = vmatpush3.msra.mxu1 %v4626_v46  ;;  %3381 = vmatpush3.msra.mxu0 %v4470_v58  ;;  %v5334_v58 = vmov %v5330_v7 }
  0xd9   : > { %3338 = vmatmul.mubr.f32.gmra.mxu0 %v4689_v22  ;;  %3368 = vmatprep.subr.mxu1 %v4659_v41 }
  0xda   : > { %3382 = vmatprep.subr.mxu0 %v4498_v4  ;;  %3369 = vmatpush3.msra.mxu1 %v4659_v41 }
  0xdb   : > { %3383 = vmatpush3.msra.mxu0 %v4498_v4  ;;  %3370 = vmatprep.subr.mxu1 %v4674_v39  ;;  %v4902_v4 = vunpack.c.0.s8 %v464_v59 }
  0xdc   : > { %3384 = vmatprep.subr.mxu0 %v4513_v38  ;;  %3371 = vmatpush3.msra.mxu1 %v4674_v39 }
  0xdd   : > { %3372 = vmatprep.mubr.f32.mxu1 %v5331_v36  ;;  %3385 = vmatpush3.msra.mxu0 %v4513_v38  ;;  %vm499_vm2 = vcmp.eq.s32.totalorder %v4902_v4, 3  ;;  %vm503_vm4 = vcmp.eq.s32.totalorder %v4902_v4, 0  ;;  %v4919_v38 = vunpack.c.2.s8 %v464_v59 }
  0xde   : > { %3373 = vmatmul.mubr.f32.vlgmr.msra.gmra.mxu1 %v5332_v49  ;;  %3386 = vmatprep.subr.mxu0 %v4532_v55  ;;  %vm507_vm7 = vmor %vm499_vm2, %vm503_vm4 }
  0xdf   : > { %3416 = vmatprep.subr.mxu1 %v4414_v35  ;;  %3387 = vmatpush3.msra.mxu0 %v4532_v55  ;;  %v496_v55 = vld [vmem:[%s4907_s30 + $0x8] sm:$0xff]  ;;  %vm501_vm8 = vcmp.eq.s32.totalorder %v4919_v38, 3  ;;  %vm505_vm9 = vcmp.eq.s32.totalorder %v4919_v38, 0  ;;  %vm4933_vm11 = vmxor %vm507_vm7, %vm3520_vm5  ;;  %vm494_vm7 = vcmp.eq.s32.totalorder %v490_v47, 0 }
  0xe0   : > { %3417 = vmatpush3.msra.mxu1 %v4414_v35  ;;  %3388 = vmatprep.subr.mxu0 %v4547_v17  ;;  %v5335_v35 = vld [vmem:[#allocation11_spill] sm:$0xff]  ;;  %vm4941_vm14 = vmor %vm501_vm8, %vm505_vm9  ;;  %vm493_vm8 = vcmp.eq.s32.totalorder %v489_v60, 0  ;;  %vm2447_vm9 = vcmp.eq.s32.totalorder %v4902_v4, 14 }
  0xe1   : > { %3418 = vmatprep.subr.mxu1 %v4422_v40  ;;  %3375 = vmatprep.mubr.f32.mxu1 %v5333_v53 }
  0xe2   : > { %3389 = vmatpush3.msra.mxu0 %v4547_v17  ;;  %3419 = vmatpush3.msra.mxu1 %v4422_v40  ;;  %v5336_v40 = vld [vmem:[#allocation12_spill] sm:$0xff]  ;;  %v488_v17 = vunpack.c.1.s8 %v486_v54 }
  0xe3   : > { %3376 = vmatmul.mubr.f32.gmra.mxu1 %v5334_v58  ;;  %3390 = vmatprep.subr.mxu0 %v4563_v56 }
  0xe4   : > { %3420 = vmatprep.subr.mxu1 %v4445_v42  ;;  %3391 = vmatpush3.msra.mxu0 %v4563_v56  ;;  %v3521_v56 = vmov 0.0   ;;  %vm492_vm15 = vcmp.eq.s32.totalorder %v488_v17, 0 }
  0xe5   : > { %3421 = vmatpush3.msra.mxu1 %v4445_v42  ;;  %3392 = vmatprep.subr.mxu0 %v4591_v19  ;;  %v5337_v42 = vld [vmem:[#allocation13_spill] sm:$0xff] }
  0xe6   : > { %3422 = vmatprep.subr.mxu1 %v4454_v61  ;;  %3393 = vmatpush3.msra.mxu0 %v4591_v19  ;;  %v2432_v19 = vmax.f32 %v496_v55, 0.0  ;;  %v2836_v55 = vsel %vm2447_vm9, 1.0, %v3521_v56 }
  0xe7   : > { %3423 = vmatpush3.msra.mxu1 %v4454_v61  ;;  %3394 = vmatprep.subr.mxu0 %v5335_v35  ;;  %v5338_v61 = vld [vmem:[#allocation14_spill] sm:$0xff] }
  0xe8   : > { %3424 = vmatprep.subr.mxu1 %v4477_v43  ;;  %3395 = vmatpush3.msra.mxu0 %v5335_v35 }
  0xe9   : > { %3425 = vmatpush3.msra.mxu1 %v4477_v43  ;;  %3396 = vmatprep.subr.mxu0 %v5336_v40  ;;  %v5340_v43 = vld [vmem:[#allocation16_spill] sm:$0xff] }
  0xea   : > { %3426 = vmatprep.subr.mxu1 %v4491_v3  ;;  %3397 = vmatpush3.msra.mxu0 %v5336_v40 }
  0xeb   : > { %3427 = vmatpush3.msra.mxu1 %v4491_v3  ;;  %3398 = vmatprep.subr.mxu0 %v5337_v42  ;;  %v4900_v3 = vunpack.c.1.s8 %v464_v59 }
  0xec   : > { %3428 = vmatprep.subr.mxu1 %v4502_v5  ;;  %3399 = vmatpush3.msra.mxu0 %v5337_v42 }
  0xed   : > { %3429 = vmatpush3.msra.mxu1 %v4502_v5  ;;  %3400 = vmatprep.subr.mxu0 %v5338_v61  ;;  %vm500_vm0 = vcmp.eq.s32.totalorder %v4900_v3, 3  ;;  %vm504_vm1 = vcmp.eq.s32.totalorder %v4900_v3, 0  ;;  %v495_v5 = vld [vmem:[%s4907_s30] sm:$0xff] }
  0xee   : > { %3430 = vmatprep.subr.mxu1 %v4527_v15  ;;  %3401 = vmatpush3.msra.mxu0 %v5338_v61  ;;  %vm508_vm3 = vmor %vm500_vm0, %vm504_vm1 }
  0xef   : > { %3431 = vmatpush3.msra.mxu1 %v4527_v15  ;;  %3402 = vmatprep.subr.mxu0 %v5339_v45  ;;  %vm512_vm6 = vmxor %vm508_vm3, %vm3520_vm5  ;;  %v4926_v15 = vunpack.c.3.s8 %v464_v59 }
  0xf0   : > { %3432 = vmatprep.subr.mxu1 %v4543_v28  ;;  %3403 = vmatpush3.msra.mxu0 %v5339_v45  ;;  %v2833_v18 = vsel %vm512_vm6, 1.0, %v3521_v56  ;;  %vm513_vm3 = vmxor %vm4941_vm14, %vm3520_vm5  ;;  %vm2685_vm14 = vcmask 15360  }
  0xf1   : > { %3433 = vmatpush3.msra.mxu1 %v4543_v28  ;;  %3404 = vmatprep.subr.mxu0 %v5340_v43  ;;  %v2431_v28 = vmax.f32 %v495_v5, 0.0  ;;  %vm502_vm12 = vcmp.eq.s32.totalorder %v4926_v15, 3  ;;  %vm506_vm13 = vcmp.eq.s32.totalorder %v4926_v15, 0 }
  0xf2   : > { %3434 = vmatprep.subr.mxu1 %v4553_v21  ;;  %3405 = vmatpush3.msra.mxu0 %v5340_v43  ;;  %vm510_vm1 = vmor %vm502_vm12, %vm506_vm13  ;;  %vm2450_vm12 = vcmp.eq.s32.totalorder %v4926_v15, 14  ;;  %vm2683_vm13 = vcmask 7168  }
  0xf3   : > { %3435 = vmatpush3.msra.mxu1 %v4553_v21  ;;  %3406 = vmatprep.subr.mxu0 %v4717_v2  ;;  %v470_v21 = vunpack.c.0.s8 %v4916_v8  ;;  %vm514_vm2 = vmxor %vm510_vm1, %vm3520_vm5  ;;  %v2435_v22 = vmin.f32 %v2431_v28, 1.0  ;;  %vm476_vm5 = vcmp.ne.s32.totalorder %v472_v23, 0  ;;  %vm2691_vm1 = vcmask 39936  }
  0xf4   : > { %3436 = vmatprep.subr.mxu1 %v4572_v51  ;;  %3407 = vmatpush3.msra.mxu0 %v4717_v2  ;;  %v2436_v2 = vmin.f32 %v2432_v19, 1.0  ;;  %v2830_v35 = vsel %vm476_vm5, 1.0, %v3521_v56 }
  0xf5   : > { %3437 = vmatpush3.msra.mxu1 %v4572_v51  ;;  %3408 = vmatprep.subr.mxu0 %v4727_v0  ;;  %v2829_v51 = vsel %vm475_vm10, 1.0, %v3521_v56  ;;  %vm474_vm0 = vcmp.ne.s32.totalorder %v470_v21, 0  ;;  %vm2448_vm10 = vcmp.eq.s32.totalorder %v4900_v3, 14  ;;  %v2839_v3 = vsel %vm2450_vm12, 1.0, %v3521_v56 }
  0xf6   : > { %3438 = vmatprep.subr.mxu1 %v4588_v52  ;;  %3409 = vmatpush3.msra.mxu0 %v4727_v0  ;;  %v4945_v62 = vmul.f32 %v2833_v18, %v2829_v51  ;;  %v2828_v12 = vsel %vm474_vm0, 1.0, %v3521_v56  ;;  %v2434_v0 = vmax.f32 %v498_v29, 0.0  ;;  %v2440_v27 = vmul.f32 %v2833_v18, %v2436_v2 }
  0xf7   : > { %3410 = vmatprep.mubr.f32.mxu0 %v4602_v32  ;;  %3439 = vmatpush3.msra.mxu1 %v4588_v52  ;;  %v2444_v49 = vadd.f32 %v2833_v18, %v2436_v2  ;;  %vm2689_vm0 = vcmask 31744  }
  0xf8   : > { %3411 = vmatmul.mubr.f32.vlgmr.msra.gmra.mxu0 %v4616_v48  ;;  %3440 = vmatprep.subr.mxu1 %v4608_v24  ;;  %v2438_v34 = vmin.f32 %v2434_v0, 1.0 }
  0xf9   : > { %3441 = vmatpush3.msra.mxu1 %v4608_v24  ;;  %3413 = vmatprep.mubr.f32.mxu0 %v4641_v30  ;;  %v3522_v24 = vmov 0.04  }
  0xfa   : > { %3442 = vmatprep.subr.mxu1 %v4626_v46  ;;  %3448 = vmatprep.mubr.f32.mxu1 %v4602_v32  ;;  %v497_v32 = vld [vmem:[%s4907_s30 + $0x10] sm:$0xff]  ;;  %v528_v9 = vsel %vm492_vm15, 1.0, %v3522_v24  ;;  %v530_v57 = vsel %vm494_vm7, 1.0, %v3522_v24  ;;  %v529_v40 = vsel %vm493_vm8, 1.0, %v3522_v24  ;;  %vm2687_vm15 = vcmask 23552  }
  0xfb   : > { %3443 = vmatpush3.msra.mxu1 %v4626_v46  ;;  %v2832_v46 = vsel %vm4933_vm11, 1.0, %v3521_v56  ;;  %v4955_v44 = vmul.f32 %v528_v9, %v4945_v62  ;;  %v4963_v25 = vpop.f32.mrf.mxu0  ;;  %v2433_v14 = vmax.f32 %v497_v32, 0.0  ;;  %vm2449_vm11 = vcmp.eq.s32.totalorder %v4919_v38, 14 }
  0xfc   : > { %3414 = vmatmul.mubr.f32.gmra.mxu0 %v4661_v37  ;;  %3444 = vmatprep.subr.mxu1 %v4659_v41  ;;  %v4957_v33 = vmul.f32 %v2832_v46, %v2828_v12  ;;  %v2439_v7 = vmul.f32 %v2832_v46, %v2435_v22  ;;  %v2443_v16 = vadd.f32 %v2832_v46, %v2435_v22  ;;  %v2838_v4 = vsel %vm2449_vm11, 1.0, %v3521_v56 }
  0xfd   : > { %3445 = vmatpush3.msra.mxu1 %v4659_v41  ;;  %5345 = vst [vmem:[#allocation35_spill] sm:$0xff] %v4955_v44  ;;  %v2835_v41 = vsel %vm514_vm2, 1.0, %v3521_v56  ;;  %v2437_v31 = vmin.f32 %v2433_v14, 1.0  ;;  %v4973_v13 = vpop.f32.mrf.mxu0  ;;  %vm2693_vm2 = vcmask 48128  }
  0xfe   : > { %3446 = vmatprep.subr.mxu1 %v4674_v39  ;;  %v2442_v6 = vmul.f32 %v2835_v41, %v2438_v34  ;;  %v2585_v58 = vadd.f32 %v2440_v27, %v2439_v7  ;;  %v2446_v42 = vadd.f32 %v2835_v41, %v2438_v34  ;;  %v2602_v45 = vadd.f32 %v2444_v49, %v2443_v16 }
  0xff   : > { %3447 = vmatpush3.msra.mxu1 %v4674_v39  ;;  %v4986_v59 = vpop.f32.mrf.mxu1  ;;  %v2506_v38 = vmul.f32 %v2836_v55, %v2439_v7  ;;  %v2523_v51 = vmul.f32 %v2836_v55, %v2443_v16 }
 0x100   : > { %3449 = vmatmul.mubr.f32.vlgmr.msra.gmra.mxu1 %v4616_v48  ;;  %v487_v48 = vunpack.c.0.s8 %v486_v54  ;;  %v2837_v54 = vsel %vm2448_vm10, 1.0, %v3521_v56  ;;  %v2509_v32 = vmul.f32 %v2839_v3, %v2442_v6  ;;  %v2526_v12 = vmul.f32 %v2839_v3, %v2446_v42 }
 0x101   : > { %3451 = vmatprep.mubr.f32.mxu1 %v4641_v30  ;;  %v473_v30 = vunpack.c.3.s8 %v4916_v8  ;;  %v2507_v21 = vmul.f32 %v2837_v54, %v2440_v27  ;;  %v2653_v20 = vadd.f32 %v2837_v54, %v2836_v55  ;;  %v2524_v18 = vmul.f32 %v2837_v54, %v2444_v49  ;;  %v4996_v52 = vpop.f32.mrf.mxu1 }
 0x102   : > { %vm491_vm4 = vcmp.eq.s32.totalorder %v487_v48, 0 }
 0x103   : > { %v527_v39 = vsel %vm491_vm4, 1.0, %v3522_v24  ;;  %vm477_vm6 = vcmp.ne.s32.totalorder %v473_v30, 0  ;;  %v2619_v24 = vadd.f32 %v2507_v21, %v2506_v38  ;;  %v2636_v48 = vadd.f32 %v2524_v18, %v2523_v51 }
 0x104   : > { %3452 = vmatmul.mubr.f32.gmra.mxu1 %v4661_v37  ;;  %v2834_v37 = vsel %vm513_vm3, 1.0, %v3521_v56  ;;  %v4968_v11 = vmul.f32 %v527_v39, %v4957_v33  ;;  %v2831_v1 = vsel %vm477_vm6, 1.0, %v3521_v56  ;;  %v2670_v56 = vadd.f32 %v4945_v62, %v4957_v33 }
 0x105   : > { %v4971_v50 = vmul.f32 %v2835_v41, %v2831_v1  ;;  %v2441_v63 = vmul.f32 %v2834_v37, %v2437_v31  ;;  %v2445_v53 = vadd.f32 %v2834_v37, %v2437_v31  ;;  %v525_v61 = vmul.f32 %v2834_v37, %v2830_v35 }
 0x106   : > { %5346 = vst [vmem:[#allocation17_spill] sm:$0xff] %v4968_v11  ;;  %v2654_v30 = vadd.f32 %v2838_v4, %v2653_v20  ;;  %vm2695_vm3 = vcmask 56320   ;;  %vm2697_vm4 = vcmask 57344  }
 0x107   : > { %v4977_v26 = vmul.f32 %v530_v57, %v4971_v50  ;;  %v2586_v43 = vadd.f32 %v2585_v58, %v2441_v63  ;;  %v4990_v8 = vmul.f32 %v529_v40, %v525_v61  ;;  %v2603_v10 = vadd.f32 %v2602_v45, %v2445_v53 }
 0x108   : > { %v2508_v15 = vmul.f32 %v2838_v4, %v2441_v63  ;;  %v2525_v9 = vmul.f32 %v2838_v4, %v2445_v53  ;;  %v2671_v41 = vadd.f32 %v2670_v56, %v525_v61  ;;  %v2655_v57 = vadd.f32 %v2839_v3, %v2654_v30 }
 0x109   : > { %5347 = vst [vmem:[#allocation36_spill] sm:$0xff] %v4977_v26  ;;  %5348 = vst [vmem:[#allocation18_spill] sm:$0xff] %v4990_v8  ;;  %v2587_v28 = vadd.f32 %v2586_v43, %v2442_v6  ;;  %v2604_v17 = vadd.f32 %v2603_v10, %v2446_v42  ;;  %v2876_v26 = vadd.f32 %v4973_v13, %v4963_v25 }
 0x10a   : > { %v2620_v29 = vadd.f32 %v2619_v24, %v2508_v15  ;;  %v2637_v47 = vadd.f32 %v2636_v48, %v2525_v9  ;;  %v5005_v0 = vadd.f32 %v2671_v41, %v4971_v50 }
 0x10b   : > { %2588 = vadd.xlane.f32.xlu0 %v2587_v28  ;;  %2605 = vadd.xlane.f32.xlu1 %v2604_v17 }
 0x10c   : > { %v2621_v14 = vadd.f32 %v2620_v29, %v2509_v32  ;;  %v5002_v39 = vadd.f32 %v2637_v47, %v2526_v12  ;;  %5350 = vst [vmem:[#allocation20_spill] sm:$0xff] %v5005_v0 }
 0x10d   : > { %v4979_v36 = vpop.f32.mrf.mxu0 }
 0x10e   : > { %5349 = vst [vmem:[#allocation3_spill] sm:$0xff] %v5002_v39 }
 0x10f   : > { %v4988_v5 = vpop.f32.mrf.mxu0  ;;  %2622 = vadd.xlane.f32.xlu1 %v2621_v14 }
 0x110   : > { %v2879_v47 = vadd.f32 %v4988_v5, %v4979_v36 }
 0x113   : > { %v4998_v19 = vpop.f32.mrf.mxu0  ;;  %2656 = vadd.xlane.f32.xlu1 %v2655_v57  ;;  %v2920_v57 = vadd.f32 %v4996_v52, %v4986_v59 }
 0x115   : > { %v2921_v46 = vpop.f32.mrf.mxu1  ;;  %v2881_v37 = vpop.f32.mrf.mxu0 }
 0x117   : > { %v2922_v1 = vpop.f32.mrf.mxu1 }
 0x118   : > { %v2923_v41 = vadd.f32 %v2922_v1, %v2921_v46  ;;  %v1017_v46 = vadd.f32 %v2920_v57, %v2876_v26 }
 0x119   : > { %v2883_v22 = vpop.f32.mrf.mxu0 }
 0x11a   : > { %v1024_v8 = vadd.f32 %v2923_v41, %v2879_v47 }
 0x11b   : > { %v2924_v2 = vpop.f32.mrf.mxu1  ;;  %v2884_v31 = vpop.f32.mrf.mxu0 }
 0x11d   : > { %v2925_v62 = vpop.f32.mrf.mxu1 }
 0x11e   : > { %v2926_v5 = vadd.f32 %v2925_v62, %v2924_v2 }
 0x11f   : > { %v2962_v33 = vpop.f32.mrf.mxu0 }
 0x121   : > { %v2927_v34 = vpop.f32.mrf.mxu1  ;;  %v2963_v7 = vpop.f32.mrf.mxu0 }
 0x122   : > { %v2964_v11 = vadd.f32 %v2963_v7, %v2962_v33 }
 0x123   : > { %v2928_v23 = vpop.f32.mrf.mxu1 }
 0x124   : > { %v2929_v36 = vadd.f32 %v2928_v23, %v2927_v34  ;;  %v1176_v41 = vadd.f32 %v2964_v11, %v1017_v46 }
 0x125   : > { %v2965_v60 = vpop.f32.mrf.mxu0 }
 0x127   : > { %v2966_v27 = vpop.f32.mrf.mxu0 }
 0x128   : > { %v2967_v0 = vadd.f32 %v2966_v27, %v2965_v60 }
 0x12a   : > { %v3006_v16 = vpop.f32.mrf.mxu1  ;;  %v1185_v52 = vadd.f32 %v2967_v0, %v1024_v8 }
 0x12b   : > { %v2968_v6 = vpop.f32.mrf.mxu0 }
 0x12c   : > { %v3007_v63 = vpop.f32.mrf.mxu1 }
 0x12d   : > { %v2969_v50 = vpop.f32.mrf.mxu0  ;;  %v3008_v59 = vadd.f32 %v3007_v63, %v3006_v16 }
 0x12e   : > { %v2970_v60 = vadd.f32 %v2969_v50, %v2968_v6 }
 0x12f   : > { %v1311_v2 = vadd.f32 %v3008_v59, %v1176_v41 }
 0x130   : > { %v2971_v58 = vpop.f32.mrf.mxu0 }
 0x131   : > { %v3009_v49 = vpop.f32.mrf.mxu1 }
 0x132   : > { %v2972_v40 = vpop.f32.mrf.mxu0 }
 0x133   : > { %v3010_v53 = vpop.f32.mrf.mxu1  ;;  %v2973_v13 = vadd.f32 %v2972_v40, %v2971_v58 }
 0x134   : > { %v3011_v44 = vadd.f32 %v3010_v53, %v3009_v49 }
 0x136   : > { %v3012_v35 = vpop.f32.mrf.mxu1  ;;  %v1322_v47 = vadd.f32 %v3011_v44, %v1185_v52 }
 0x138   : > { %v3013_v42 = vpop.f32.mrf.mxu1 }
 0x13b   : > { %v3015_v45 = vpop.f32.mrf.mxu1 }
 0x13d   : > { %v3016_v10 = vpop.f32.mrf.mxu1 }
 0x148   : > { %v3050_v61 = vpop.f32.mrf.mxu0 }
 0x14a   : > { %v3051_v43 = vpop.f32.mrf.mxu0 }
 0x14b   : > { %v3052_v7 = vadd.f32 %v3051_v43, %v3050_v61 }
 0x14d   : > { %v3053_v55 = vpop.f32.mrf.mxu0  ;;  %v1512_v0 = vadd.f32 %v3052_v7, %v1311_v2 }
 0x14f   : > { %v3054_v28 = vpop.f32.mrf.mxu0 }
 0x150   : > { %v3055_v27 = vadd.f32 %v3054_v28, %v3053_v55 }
 0x152   : > { %v3094_v54 = vpop.f32.mrf.mxu1  ;;  %v1519_v62 = vadd.f32 %v3055_v27, %v1322_v47  ;;  %v5355_v47 = vld [vmem:[#allocation35_spill] sm:$0xff] }
 0x153   : > { %v3056_v3 = vpop.f32.mrf.mxu0 }
 0x154   : > { %v3095_v4 = vpop.f32.mrf.mxu1 }
 0x155   : > { %v3057_v38 = vpop.f32.mrf.mxu0  ;;  %v3096_v34 = vadd.f32 %v3095_v4, %v3094_v54 }
 0x156   : > { %v3058_v23 = vadd.f32 %v3057_v38, %v3056_v3 }
 0x158   : > { %v3059_v15 = vpop.f32.mrf.mxu0 }
 0x159   : > { %v3097_v17 = vpop.f32.mrf.mxu1 }
 0x15a   : > { %v3060_v51 = vpop.f32.mrf.mxu0 }
 0x15b   : > { %v3098_v21 = vpop.f32.mrf.mxu1  ;;  %v3061_v16 = vadd.f32 %v3060_v51, %v3059_v15 }
 0x15c   : > { %v3099_v33 = vadd.f32 %v3098_v21, %v3097_v17 }
 0x15e   : > { %v3100_v20 = vpop.f32.mrf.mxu1  ;;  %v1644_v63 = vadd.f32 %v3099_v33, %v1519_v62  ;;  %v5356_v33 = vld [vmem:[#allocation17_spill] sm:$0xff] }
 0x160   : > { %v3101_v18 = vpop.f32.mrf.mxu1 }
 0x161   : > { %v3102_v58 = vadd.f32 %v3101_v18, %v3100_v20 }
 0x163   : > { %v3103_v24 = vpop.f32.mrf.mxu1 }
 0x165   : > { %v3104_v12 = vpop.f32.mrf.mxu1 }
 0x166   : > { %v3105_v40 = vadd.f32 %v3104_v12, %v3103_v24 }
 0x170   : > { %v3260_v32 = vpop.f32.mrf.mxu0 }
 0x171   : > { %v1759_v61 = vadd.f32 %v3260_v32, %v1644_v63 }
 0x172   : > { %v1748_v9 = vpop.f32.mrf.mxu0 }
 0x175   : > { %v5007_v48 = vpop.f32.mrf.mxu0 }
 0x176   : > { %5351 = vst [vmem:[#allocation22_spill] sm:$0xff] %v5007_v48  ;;  %v2882_v48 = vadd.f32 %v2881_v37, %v4998_v19  ;;  %v3014_v19 = vadd.f32 %v3013_v42, %v3012_v35  ;;  %v3017_v37 = vadd.f32 %v3016_v10, %v3015_v45  ;;  %v1637_v35 = vadd.f32 %v3096_v34, %v1512_v0 }
 0x177   : > { %v5009_v29 = vpop.f32.mrf.mxu0 }
 0x178   : > { %5352 = vst [vmem:[#allocation24_spill] sm:$0xff] %v5009_v29  ;;  %v2885_v29 = vadd.f32 %v2884_v31, %v2883_v22  ;;  %v1031_v49 = vadd.f32 %v2926_v5, %v2882_v48  ;;  %v1749_v10 = vadd.f32 %v1748_v9, %v1637_v35 }
 0x17a   : > { %v3298_v56 = vpop.f32.mrf.mxu1  ;;  %v1038_v53 = vadd.f32 %v2929_v36, %v2885_v29  ;;  %v1194_v26 = vadd.f32 %v2970_v60, %v1031_v49 }
 0x17b   : > { %v1936_v55 = vadd.f32 %v3298_v56, %v1759_v61 }
 0x17c   : > { %v1929_v30 = vpop.f32.mrf.mxu1  ;;  %v1203_v8 = vadd.f32 %v2973_v13, %v1038_v53  ;;  %v1333_v6 = vadd.f32 %v3014_v19, %v1194_v26  ;;  %v5359_v26 = vld [vmem:[#allocation3_spill] sm:$0xff] }
 0x17d   : > { %v1930_v3 = vadd.f32 %v1929_v30, %v1749_v10  ;;  %v5353_v21 = vld [vmem:[#allocation22_spill] sm:$0xff] }
 0x17e   : > { %v1344_v11 = vadd.f32 %v3017_v37, %v1203_v8  ;;  %v1526_v45 = vadd.f32 %v3058_v23, %v1333_v6  ;;  %v5357_v37 = vld [vmem:[#allocation18_spill] sm:$0xff]  ;;  %v5360_v8 = vld [vmem:[#allocation20_spill] sm:$0xff] }
 0x17f   : > { %v3301_v39 = vpop.f32.mrf.mxu1  ;;  %v5354_v51 = vld [vmem:[#allocation24_spill] sm:$0xff] }
 0x180   : > { %v1533_v43 = vadd.f32 %v3061_v16, %v1344_v11  ;;  %v1651_v17 = vadd.f32 %v3102_v58, %v1526_v45 }
 0x181   : > { %v1941_v25 = vpop.f32.mrf.mxu1 }
 0x182   : > { %v1658_v4 = vadd.f32 %v3105_v40, %v1533_v43  ;;  %v1769_v48 = vadd.f32 %v5354_v51, %v1651_v17 }
 0x184   : > { %v1779_v15 = vadd.f32 %v5353_v21, %v1658_v4  ;;  %v1942_v12 = vadd.f32 %v1941_v25, %v1769_v48 }
 0x186   : > { %v1948_v24 = vadd.f32 %v3301_v39, %v1779_v15 }
 0x194   : > { %v3336_v14 = vpop.f32.mrf.mxu0  ;;  %v2606_v0 = vpop.xlane.xlu1 %2605 }
 0x195   : > { %v2059_v38 = vadd.f32 %v3336_v14, %v1936_v55  ;;  %v2589_v16 = vpop.xlane.xlu0 %2588  ;;  %v2607_v6 = vrot.slane %v2606_v0, 4 }
 0x196   : > { %v2051_v1 = vpop.f32.mrf.mxu0  ;;  %v2590_v63 = vrot.slane %v2589_v16, 4 }
 0x197   : > { %v2052_v29 = vadd.f32 %v2051_v1, %v1930_v3  ;;  %v2608_v40 = vadd.f32 %v2607_v6, %v2606_v0 }
 0x198   : > { %v2623_v23 = vpop.xlane.xlu1 %2622 }
 0x199   : > { %v3339_v22 = vpop.f32.mrf.mxu0  ;;  %v2609_v43 = vrot.slane %v2608_v40, 2 }
 0x19a   : > { %v2073_v56 = vadd.f32 %v3339_v22, %v1948_v24 }
 0x19b   : > { %v2065_v44 = vpop.f32.mrf.mxu0  ;;  %v2610_v21 = vadd.f32 %v2609_v43, %v2608_v40 }
 0x19c   : > { %v2066_v36 = vadd.f32 %v2065_v44, %v1942_v12  ;;  %v2657_v11 = vpop.xlane.xlu1 %2656  ;;  %v2624_v44 = vrot.slane %v2623_v23, 4 }
 0x19d   : > { %v2658_v58 = vrot.slane %v2657_v11, 4 }
 0x19e   : > { %v3374_v31 = vpop.f32.mrf.mxu1  ;;  %v2625_v61 = vadd.f32 %v2624_v44, %v2623_v23 }
 0x19f   : > { %v2170_v20 = vadd.f32 %v3374_v31, %v2059_v38  ;;  %v5358_v31 = vld [vmem:[#allocation36_spill] sm:$0xff]  ;;  %v2659_v45 = vadd.f32 %v2658_v58, %v2657_v11 }
 0x1a0   : > { %v2161_v50 = vpop.f32.mrf.mxu1  ;;  %v2626_v55 = vrot.slane %v2625_v61, 2 }
 0x1a1   : > { %v2162_v57 = vadd.f32 %v2161_v50, %v2052_v29  ;;  %v2591_v50 = vadd.f32 %v2590_v63, %v2589_v16 }
 0x1a2   : > { %v2627_v15 = vadd.f32 %v2626_v55, %v2625_v61 }
 0x1a3   : > { %v3377_v54 = vpop.f32.mrf.mxu1  ;;  %v2592_v35 = vrot.slane %v2591_v50, 2 }
 0x1a4   : > { %v2186_v14 = vadd.f32 %v3377_v54, %v2073_v56 }
 0x1a5   : > { %v2177_v18 = vpop.f32.mrf.mxu1  ;;  %v2593_v17 = vadd.f32 %v2592_v35, %v2591_v50 }
 0x1a6   : > { %v2178_v27 = vadd.f32 %v2177_v18, %v2066_v36 }
 0x1a7   : > { %v2594_v18 = vrot.slane %v2593_v17, 1 }
 0x1b8   : > { %v3412_v42 = vpop.f32.mrf.mxu0 }
 0x1b9   : > { %v2311_v5 = vadd.f32 %v3412_v42, %v2170_v20 }
 0x1ba   : > { %v2304_v28 = vpop.f32.mrf.mxu0 }
 0x1bb   : > { %v2305_v46 = vadd.f32 %v2304_v28, %v2162_v57  ;;  %v2660_v28 = vrot.slane %v2659_v45, 2  ;;  %v2611_v57 = vrot.slane %v2610_v21, 1 }
 0x1bc   : > { %v3415_v32 = vpop.f32.mrf.mxu0 }
 0x1bd   : > { %v2323_v41 = vadd.f32 %v3415_v32, %v2186_v14  ;;  %v2661_v29 = vadd.f32 %v2660_v28, %v2659_v45 }
 0x1be   : > { %v2316_v59 = vpop.f32.mrf.mxu0 }
 0x1bf   : > { %v2317_v1 = vadd.f32 %v2316_v59, %v2178_v27 }
 0x1c0   : > { %v3450_v9 = vpop.f32.mrf.mxu1 }
 0x1c1   : > { %v2416_v52 = vadd.f32 %v3450_v9, %v2311_v5  ;;  %v2628_v5 = vrot.slane %v2627_v15, 1 }
 0x1c2   : > { %v2409_v30 = vpop.f32.mrf.mxu1 }
 0x1c3   : > { %v2410_v60 = vadd.f32 %v2409_v30, %v2305_v46  ;;  %v2464_v7 = vmul.f32 %v2416_v52, %v5355_v47  ;;  %v2595_v46 = vadd.f32 %v2594_v18, %v2593_v17  ;;  %v2662_v52 = vrot.slane %v2661_v29, 1 }
 0x1c4   : > { %v3453_v13 = vpop.f32.mrf.mxu1  ;;  %v2612_v30 = vadd.f32 %v2611_v57, %v2610_v21  ;;  %v2629_v27 = vadd.f32 %v2628_v5, %v2627_v15 }
 0x1c5   : > { %v2463_v39 = vmul.f32 %v2410_v60, %v5356_v33  ;;  %v2428_v53 = vadd.f32 %v3453_v13, %v2323_v41  ;;  %v2663_v41 = vadd.f32 %v2662_v52, %v2661_v29 }
 0x1c6   : > { %v2421_v25 = vpop.f32.mrf.mxu1 }
 0x1c7   : > { %v2568_v49 = vadd.f32 %v2464_v7, %v2463_v39  ;;  %v2422_v19 = vadd.f32 %v2421_v25, %v2317_v1  ;;  %v2466_v2 = vmul.f32 %v2428_v53, %v5358_v31 }
 0x1c9   : > { %v2465_v22 = vmul.f32 %v2422_v19, %v5357_v37 }
 0x1cb   : > { %v2569_v62 = vadd.f32 %v2568_v49, %v2465_v22 }
 0x1cd   : > { %v2570_v34 = vadd.f32 %v2569_v62, %v2466_v2 }
 0x1cf   : > { %2571 = vadd.xlane.f32.xlu0 %v2570_v34 }
 0x1d3   : > { %2639 = vadd.xlane.f32.xlu0 %v5359_v26 }
 0x1d7   : > { %2673 = vadd.xlane.f32.xlu0 %v5360_v8 }
 0x258   : > { %v2572_v42 = vpop.xlane.xlu0 %2571 }
 0x259   : > { %v2573_v10 = vrot.slane %v2572_v42, 4 }
 0x25b   : > { %v2574_v54 = vadd.f32 %v2573_v10, %v2572_v42 }
 0x25c   : > { %v2640_v4 = vpop.xlane.xlu0 %2639 }
 0x25d   : > { %v2575_v3 = vrot.slane %v2574_v54, 2  ;;  %v2641_v38 = vrot.slane %v2640_v4, 4 }
 0x25f   : > { %v2642_v51 = vadd.f32 %v2641_v38, %v2640_v4  ;;  %v2576_v48 = vadd.f32 %v2575_v3, %v2574_v54 }
 0x260   : > { %v2674_v20 = vpop.xlane.xlu0 %2673 }
 0x261   : > { %v2643_v32 = vrot.slane %v2642_v51, 2  ;;  %v2675_v24 = vrot.slane %v2674_v20, 4  ;;  %v2577_v12 = vrot.slane %v2576_v48, 1 }
 0x263   : > { %v2676_v9 = vadd.f32 %v2675_v24, %v2674_v20  ;;  %v2578_v56 = vadd.f32 %v2577_v12, %v2576_v48  ;;  %v2644_v36 = vadd.f32 %v2643_v32, %v2642_v51 }
 0x265   : > { %v2677_v59 = vrot.slane %v2676_v9, 2  ;;  %3455 = vpush %v2578_v56  ;;  %v2645_v14 = vrot.slane %v2644_v36, 1 }
 0x266   : > { %3457 = vpush %v2595_v46 }
 0x267   : > { %v2678_v60 = vadd.f32 %v2677_v59, %v2676_v9  ;;  %3459 = vpush %v2612_v30  ;;  %v2646_v13 = vadd.f32 %v2645_v14, %v2644_v36 }
 0x268   : > { %3461 = vpush %v2629_v27 }
 0x269   : > { %3463 = vpush %v2646_v13  ;;  %v2679_v1 = vrot.slane %v2678_v60, 1 }
 0x26a   : > { %3465 = vpush %v2663_v41 }
 0x26b   : > { %v2680_v47 = vadd.f32 %v2679_v1, %v2678_v60 }
 0x26d   : > { %3467 = vpush %v2680_v47 }
 0x296   : > { %s3456_s13 = spop %3455 }
 0x297   : > { %v2580_v7 = vstv %s3456_s13  ;;  %s3458_s14 = spop %3457 }
 0x298   : > { %v2597_v33 = vstv %s3458_s14  ;;  %s3460_s15 = spop %3459 }
 0x299   : > { %v2684_v39 = vsel %vm2683_vm13, %v2580_v7, %v2597_v33  ;;  %v2614_v25 = vstv %s3460_s15  ;;  %s3462_s16 = spop %3461 }
 0x29a   : > { %v2686_v49 = vsel %vm2685_vm14, %v2684_v39, %v2614_v25  ;;  %v2631_v53 = vstv %s3462_s16  ;;  %s3464_s17 = spop %3463 }
 0x29b   : > { %v2688_v19 = vsel %vm2687_vm15, %v2686_v49, %v2631_v53  ;;  %v2648_v37 = vstv %s3464_s17  ;;  %s3466_s18 = spop %3465 }
 0x29c   : > { %v2690_v22 = vsel %vm2689_vm0, %v2688_v19, %v2648_v37  ;;  %v2665_v31 = vstv %s3466_s18 }
 0x29d   : > { %v2692_v2 = vsel %vm2691_vm1, %v2690_v22, %v2665_v31 }
 0x29e   : > { %s3468_s19 = spop %3467 }
 0x29f   : > { %v2682_v62 = vstv %s3468_s19 }
 0x2a0   : > { %v2694_v34 = vsel %vm2693_vm2, %v2692_v2, %v2682_v62 }
 0x2a1   : > { %v2696_v26 = vsel %vm2695_vm3, %v2694_v34, 0.0 }
 0x2a2   : > { %2698 = vst.msk [vmem:[%s431_s22] sm:$0x1] %vm2697_vm4, %v2696_v26 }
 0x2a3 PF: > { %s17_s26 = sadd.s32 1, %s3518_s26   ;;  %s5361_s24 = smov %s3514_s25 }
 0x2a4   : > { %p14_p6 = scmp.ge.s32.totalorder %s17_s26, 4   ;;  %s5362_s25 = smov %s5364_s27 }
 0x2a6   :  { %16 = sbr.rel (!%p14_p6) target bundleno = 2 (0x2), region = 107 }

</bundles_post_ra>
